<compile_context>
chip_gen: v7x
topology: tpu7x:2x2x1
jax: 0.10.0
libtpu: 0.0.40
codegen_flags: <defaults>
</compile_context>

<pallas_src>
import functools

import jax
import jax.numpy as jnp
from jax.experimental import pallas as pl
from jax.experimental.pallas import tpu as pltpu


# ---------------------------------------------------------------------------
# Fused Pallas kernel: matmul (+bias) (+InstanceNorm) (+LeakyReLU)
# ---------------------------------------------------------------------------
def _fused_block_kernel(*refs, has_bias, do_norm, do_act, eps, neg_slope):
    """One batch element per grid step.

    refs: patches (1, Mb, K) bf16, weights (K, Cout) bf16,
          [bias (1, Cout) f32], out (1, Mb, Cout).
    Mb = Ho*Wo rows of this batch element; InstanceNorm reduces over rows
    (i.e. over H*W) per output channel.
    """
    if has_bias:
        p_ref, w_ref, b_ref, o_ref = refs
    else:
        p_ref, w_ref, o_ref = refs
        b_ref = None

    # MXU matmul, f32 accumulation.
    acc = jnp.dot(p_ref[0], w_ref[...], preferred_element_type=jnp.float32)

    if has_bias:
        acc = acc + b_ref[...]                       # (1, Cout) broadcast

    if do_norm:
        # InstanceNorm2d: per-channel mean/var over the H*W rows (biased var,
        # matching PyTorch). All in f32; rsqrt goes to the EUP slot.
        mean = jnp.mean(acc, axis=0, keepdims=True)        # (1, Cout)
        cen = acc - mean
        var = jnp.mean(cen * cen, axis=0, keepdims=True)   # (1, Cout)
        acc = cen * jax.lax.rsqrt(var + eps)

    if do_act:
        acc = jnp.where(acc >= 0.0, acc, neg_slope * acc)  # LeakyReLU(0.2)

    o_ref[0] = acc.astype(o_ref.dtype)


def fused_conv_block(patches, w2d, bias, *, do_norm, do_act, out_dtype,
                     eps=1e-5, neg_slope=0.2):
    """patches: (N, Mb, K) bf16, w2d: (K, Cout) bf16, bias: (Cout,) f32 or None."""
    N, Mb, K = patches.shape
    Kw, Cout = w2d.shape
    assert Kw == K
    has_bias = bias is not None

    kernel = functools.partial(
        _fused_block_kernel, has_bias=has_bias, do_norm=do_norm,
        do_act=do_act, eps=eps, neg_slope=neg_slope)

    in_specs = [
        pl.BlockSpec((1, Mb, K), lambda i: (i, 0, 0)),
        pl.BlockSpec((K, Cout), lambda i: (0, 0)),
    ]
    args = [patches, w2d]
    if has_bias:
        in_specs.append(pl.BlockSpec((1, Cout), lambda i: (0, 0)))
        args.append(bias.reshape(1, Cout).astype(jnp.float32))

    return pl.pallas_call(
        kernel,
        out_shape=jax.ShapeDtypeStruct((N, Mb, Cout), out_dtype),
        grid=(N,),
        in_specs=in_specs,
        out_specs=pl.BlockSpec((1, Mb, Cout), lambda i: (i, 0, 0)),
        compiler_params=pltpu.CompilerParams(
            dimension_semantics=("parallel",)),
    )(*args)


# ---------------------------------------------------------------------------
# Plain-JAX glue: im2col (data movement only) + weight reshaping
# ---------------------------------------------------------------------------
def im2col(x_nhwc, k, stride, pad):
    """Returns ((N, Ho*Wo, k*k*Cin) patches, (N, Ho, Wo)). No transposes."""
    N, H, W, C = x_nhwc.shape
    xp = jnp.pad(x_nhwc, ((0, 0), (pad, pad), (pad, pad), (0, 0)))
    Ho = (H + 2 * pad - k) // stride + 1
    Wo = (W + 2 * pad - k) // stride + 1
    cols = [
        xp[:, i:i + stride * Ho:stride, j:j + stride * Wo:stride, :]
        for i in range(k) for j in range(k)
    ]
    patches = jnp.concatenate(cols, axis=-1)          # (N, Ho, Wo, k*k*C)
    return patches.reshape(N, Ho * Wo, k * k * C), (N, Ho, Wo)


def to_w2d(w_oihw):
    """PyTorch (Cout, Cin, K, K) -> (K*K*Cin, Cout) bf16, matching im2col order."""
    cout, cin, k, _ = w_oihw.shape
    w = jnp.transpose(w_oihw, (2, 3, 1, 0)).reshape(k * k * cin, cout)
    return w.astype(jnp.bfloat16)


# ---------------------------------------------------------------------------
# Discriminator forward (matches the nn.Sequential exactly)
# ---------------------------------------------------------------------------
def discriminator_forward(img_nchw, params):
    # NCHW -> NHWC, bf16 for the MXU (epilogue math stays f32 inside kernels).
    x = jnp.transpose(img_nchw, (0, 2, 3, 1)).astype(jnp.bfloat16)

    # block 1: Conv(4, s=2, p=1, bias) + LeakyReLU(0.2)
    p, (N, Ho, Wo) = im2col(x, 4, 2, 1)
    y = fused_conv_block(p, to_w2d(params["w1"]), params["b1"],
                         do_norm=False, do_act=True, out_dtype=jnp.bfloat16)
    x = y.reshape(N, Ho, Wo, -1)

    # blocks 2-4: Conv(4, s=2, p=1, no bias) + InstanceNorm2d + LeakyReLU(0.2)
    for wname in ("w2", "w3", "w4"):
        p, (N, Ho, Wo) = im2col(x, 4, 2, 1)
        y = fused_conv_block(p, to_w2d(params[wname]), None,
                             do_norm=True, do_act=True, out_dtype=jnp.bfloat16)
        x = y.reshape(N, Ho, Wo, -1)

    # block 5: Conv(4, s=1, p=1, bias), no activation
    p, (N, Ho, Wo) = im2col(x, 4, 1, 1)
    y = fused_conv_block(p, to_w2d(params["w5"]), params["b5"],
                         do_norm=False, do_act=False, out_dtype=jnp.float32)
    x = y.reshape(N, Ho, Wo, 1)

    return jnp.transpose(x, (0, 3, 1, 2))             # NHWC -> NCHW


# ---------------------------------------------------------------------------
# Entry point
# ---------------------------------------------------------------------------
if __name__ == "__main__":
    key = jax.random.PRNGKey(0)
    keys = jax.random.split(key, 9)

    in_channels, features = 1, 8                       # small config (PyTorch default f=64)
    f = features
    params = {
        "w1": jax.random.normal(keys[0], (f, in_channels, 4, 4), jnp.float32) * 0.05,
        "b1": jax.random.normal(keys[1], (f,), jnp.float32) * 0.05,
        "w2": jax.random.normal(keys[2], (2 * f, f, 4, 4), jnp.float32) * 0.05,
        "w3": jax.random.normal(keys[3], (4 * f, 2 * f, 4, 4), jnp.float32) * 0.05,
        "w4": jax.random.normal(keys[4], (8 * f, 4 * f, 4, 4), jnp.float32) * 0.05,
        "w5": jax.random.normal(keys[5], (1, 8 * f, 4, 4), jnp.float32) * 0.05,
        "b5": jax.random.normal(keys[6], (1,), jnp.float32) * 0.05,
    }

    # NCHW input, spatial 32 so every stride-2 conv stays valid: 32->16->8->4->2->1
    img = jax.random.normal(keys[8], (2, in_channels, 32, 32), jnp.float32)

    out = jax.jit(discriminator_forward)(img, params)
    out = jax.block_until_ready(out)
    assert out.shape == (2, 1, 1, 1), out.shape
    assert jnp.all(jnp.isfinite(out))
    print("KERNEL_OK")
</pallas_src>

<mosaic_0001>
module attributes {stable_mosaic.version = 11 : i64} {
  func.func @_fused_block_kernel(%arg0: i32, %arg1: memref<1x256x16xbf16, #tpu.memory_space<vmem>>, %arg2: memref<16x8xbf16, #tpu.memory_space<vmem>>, %arg3: memref<1x8xf32, #tpu.memory_space<vmem>>, %arg4: memref<1x256x8xbf16, #tpu.memory_space<vmem>>) attributes {dimension_semantics = [#tpu.dimension_semantics<parallel>], iteration_bounds = array<i64: 2>, scalar_prefetch = 0 : i64, scratch_operands = 0 : i64, tpu.core_type = #tpu.core_type<tc>, window_params = [{transform_indices = @transform_0, window_bounds = array<i64: 1, 256, 16>}, {pipeline_mode = #tpu.pipeline_mode<synchronous>, transform_indices = @transform_1, window_bounds = array<i64: 16, 8>}, {pipeline_mode = #tpu.pipeline_mode<synchronous>, transform_indices = @transform_2, window_bounds = array<i64: 1, 8>}, {transform_indices = @transform_3, window_bounds = array<i64: 1, 256, 8>}]} {
    %c0 = arith.constant 0 : index
    %c0_0 = arith.constant 0 : index
    %c0_1 = arith.constant 0 : index
    %0 = vector.load %arg1[%c0, %c0_0, %c0_1] : memref<1x256x16xbf16, #tpu.memory_space<vmem>>, vector<1x256x16xbf16>
    %1 = vector.shape_cast %0 : vector<1x256x16xbf16> to vector<256x16xbf16>
    %c0_2 = arith.constant 0 : index
    %c0_3 = arith.constant 0 : index
    %2 = vector.load %arg2[%c0_2, %c0_3] : memref<16x8xbf16, #tpu.memory_space<vmem>>, vector<16x8xbf16>
    %cst = arith.constant dense<0.000000e+00> : vector<256x8xf32>
    %3 = tpu.matmul %1, %2, %cst {dimension_numbers = #tpu.dot_dimension_numbers<[1], [0], [0], [1], [0, 0, 1, 1], [], []>} : vector<256x16xbf16>, vector<16x8xbf16>, vector<256x8xf32> -> vector<256x8xf32>
    %c0_4 = arith.constant 0 : index
    %c0_5 = arith.constant 0 : index
    %4 = vector.load %arg3[%c0_4, %c0_5] : memref<1x8xf32, #tpu.memory_space<vmem>>, vector<1x8xf32>
    %5 = vector.broadcast %4 : vector<1x8xf32> to vector<256x8xf32>
    %6 = arith.addf %3, %5 : vector<256x8xf32>
    %cst_6 = arith.constant 0.000000e+00 : f32
    %7 = vector.broadcast %cst_6 : f32 to vector<256x8xf32>
    %8 = arith.cmpf oge, %6, %7 : vector<256x8xf32>
    %cst_7 = arith.constant 2.000000e-01 : f32
    %9 = vector.broadcast %cst_7 : f32 to vector<256x8xf32>
    %10 = arith.mulf %9, %6 : vector<256x8xf32>
    %11 = arith.select %8, %6, %10 : vector<256x8xi1>, vector<256x8xf32>
    %12 = arith.truncf %11 : vector<256x8xf32> to vector<256x8xbf16>
    %c0_8 = arith.constant 0 : index
    %c0_9 = arith.constant 0 : index
    %c0_10 = arith.constant 0 : index
    %13 = vector.load %arg4[%c0_8, %c0_9, %c0_10] : memref<1x256x8xbf16, #tpu.memory_space<vmem>>, vector<1x256x8xbf16>
    %14 = vector.shape_cast %13 : vector<1x256x8xbf16> to vector<256x8xbf16>
    %15 = vector.shape_cast %12 : vector<256x8xbf16> to vector<1x256x8xbf16>
    tpu.vector_store %arg4[%c0_8, %c0_9, %c0_10], %15 {strides = array<i32>} : memref<1x256x8xbf16, #tpu.memory_space<vmem>>, vector<1x256x8xbf16>,
    return
  }
  func.func @transform_0(%arg0: i32) -> (i32, i32, i32) {
    %c0_i32 = arith.constant 0 : i32
    %c0_i32_0 = arith.constant 0 : i32
    %c0_i32_1 = arith.constant 0 : i32
    return %arg0, %c0_i32, %c0_i32_0 : i32, i32, i32
  }
  func.func @transform_1(%arg0: i32) -> (i32, i32) {
    %c0_i32 = arith.constant 0 : i32
    %c0_i32_0 = arith.constant 0 : i32
    %c0_i32_1 = arith.constant 0 : i32
    return %c0_i32, %c0_i32_0 : i32, i32
  }
  func.func @transform_2(%arg0: i32) -> (i32, i32) {
    %c0_i32 = arith.constant 0 : i32
    %c0_i32_0 = arith.constant 0 : i32
    %c0_i32_1 = arith.constant 0 : i32
    return %c0_i32, %c0_i32_0 : i32, i32
  }
  func.func @transform_3(%arg0: i32) -> (i32, i32, i32) {
    %c0_i32 = arith.constant 0 : i32
    %c0_i32_0 = arith.constant 0 : i32
    %c0_i32_1 = arith.constant 0 : i32
    return %arg0, %c0_i32, %c0_i32_0 : i32, i32, i32
  }
}

module attributes {stable_mosaic.version = 11 : i64} {
  func.func @_fused_block_kernel(%arg0: i32, %arg1: memref<1x64x128xbf16, #tpu.memory_space<vmem>>, %arg2: memref<128x16xbf16, #tpu.memory_space<vmem>>, %arg3: memref<1x64x16xbf16, #tpu.memory_space<vmem>>) attributes {dimension_semantics = [#tpu.dimension_semantics<parallel>], iteration_bounds = array<i64: 2>, scalar_prefetch = 0 : i64, scratch_operands = 0 : i64, tpu.core_type = #tpu.core_type<tc>, window_params = [{transform_indices = @transform_0, window_bounds = array<i64: 1, 64, 128>}, {pipeline_mode = #tpu.pipeline_mode<synchronous>, transform_indices = @transform_1, window_bounds = array<i64: 128, 16>}, {transform_indices = @transform_2, window_bounds = array<i64: 1, 64, 16>}]} {
    %c0 = arith.constant 0 : index
    %c0_0 = arith.constant 0 : index
    %c0_1 = arith.constant 0 : index
    %0 = vector.load %arg1[%c0, %c0_0, %c0_1] : memref<1x64x128xbf16, #tpu.memory_space<vmem>>, vector<1x64x128xbf16>
    %1 = vector.shape_cast %0 : vector<1x64x128xbf16> to vector<64x128xbf16>
    %c0_2 = arith.constant 0 : index
    %c0_3 = arith.constant 0 : index
    %2 = vector.load %arg2[%c0_2, %c0_3] : memref<128x16xbf16, #tpu.memory_space<vmem>>, vector<128x16xbf16>
    %cst = arith.constant dense<0.000000e+00> : vector<64x16xf32>
    %3 = tpu.matmul %1, %2, %cst {dimension_numbers = #tpu.dot_dimension_numbers<[1], [0], [0], [1], [0, 0, 1, 1], [], []>} : vector<64x128xbf16>, vector<128x16xbf16>, vector<64x16xf32> -> vector<64x16xf32>
    %cst_4 = arith.constant dense<0.000000e+00> : vector<16xf32>
    %4 = vector.multi_reduction <add>, %3, %cst_4 [0] : vector<64x16xf32> to vector<16xf32>
    %5 = vector.shape_cast %4 : vector<16xf32> to vector<1x16xf32>
    %cst_5 = arith.constant 6.400000e+01 : f32
    %6 = vector.broadcast %cst_5 : f32 to vector<1x16xf32>
    %7 = arith.divf %5, %6 : vector<1x16xf32>
    %8 = vector.broadcast %7 : vector<1x16xf32> to vector<64x16xf32>
    %9 = arith.subf %3, %8 : vector<64x16xf32>
    %10 = arith.mulf %9, %9 : vector<64x16xf32>
    %cst_6 = arith.constant dense<0.000000e+00> : vector<16xf32>
    %11 = vector.multi_reduction <add>, %10, %cst_6 [0] : vector<64x16xf32> to vector<16xf32>
    %12 = vector.shape_cast %11 : vector<16xf32> to vector<1x16xf32>
    %cst_7 = arith.constant 6.400000e+01 : f32
    %13 = vector.broadcast %cst_7 : f32 to vector<1x16xf32>
    %14 = arith.divf %12, %13 : vector<1x16xf32>
    %cst_8 = arith.constant 9.99999974E-6 : f32
    %15 = vector.broadcast %cst_8 : f32 to vector<1x16xf32>
    %16 = arith.addf %14, %15 : vector<1x16xf32>
    %17 = math.rsqrt %16 : vector<1x16xf32>
    %18 = vector.broadcast %17 : vector<1x16xf32> to vector<64x16xf32>
    %19 = arith.mulf %9, %18 : vector<64x16xf32>
    %cst_9 = arith.constant 0.000000e+00 : f32
    %20 = vector.broadcast %cst_9 : f32 to vector<64x16xf32>
    %21 = arith.cmpf oge, %19, %20 : vector<64x16xf32>
    %cst_10 = arith.constant 2.000000e-01 : f32
    %22 = vector.broadcast %cst_10 : f32 to vector<64x16xf32>
    %23 = arith.mulf %22, %19 : vector<64x16xf32>
    %24 = arith.select %21, %19, %23 : vector<64x16xi1>, vector<64x16xf32>
    %25 = arith.truncf %24 : vector<64x16xf32> to vector<64x16xbf16>
    %c0_11 = arith.constant 0 : index
    %c0_12 = arith.constant 0 : index
    %c0_13 = arith.constant 0 : index
    %26 = vector.load %arg3[%c0_11, %c0_12, %c0_13] : memref<1x64x16xbf16, #tpu.memory_space<vmem>>, vector<1x64x16xbf16>
    %27 = vector.shape_cast %26 : vector<1x64x16xbf16> to vector<64x16xbf16>
    %28 = vector.shape_cast %25 : vector<64x16xbf16> to vector<1x64x16xbf16>
    tpu.vector_store %arg3[%c0_11, %c0_12, %c0_13], %28 {strides = array<i32>} : memref<1x64x16xbf16, #tpu.memory_space<vmem>>, vector<1x64x16xbf16>,
    return
  }
  func.func @transform_0(%arg0: i32) -> (i32, i32, i32) {
    %c0_i32 = arith.constant 0 : i32
    %c0_i32_0 = arith.constant 0 : i32
    %c0_i32_1 = arith.constant 0 : i32
    return %arg0, %c0_i32, %c0_i32_0 : i32, i32, i32
  }
  func.func @transform_1(%arg0: i32) -> (i32, i32) {
    %c0_i32 = arith.constant 0 : i32
    %c0_i32_0 = arith.constant 0 : i32
    %c0_i32_1 = arith.constant 0 : i32
    return %c0_i32, %c0_i32_0 : i32, i32
  }
  func.func @transform_2(%arg0: i32) -> (i32, i32, i32) {
    %c0_i32 = arith.constant 0 : i32
    %c0_i32_0 = arith.constant 0 : i32
    %c0_i32_1 = arith.constant 0 : i32
    return %arg0, %c0_i32, %c0_i32_0 : i32, i32, i32
  }
}

module attributes {stable_mosaic.version = 11 : i64} {
  func.func @_fused_block_kernel(%arg0: i32, %arg1: memref<1x16x256xbf16, #tpu.memory_space<vmem>>, %arg2: memref<256x32xbf16, #tpu.memory_space<vmem>>, %arg3: memref<1x16x32xbf16, #tpu.memory_space<vmem>>) attributes {dimension_semantics = [#tpu.dimension_semantics<parallel>], iteration_bounds = array<i64: 2>, scalar_prefetch = 0 : i64, scratch_operands = 0 : i64, tpu.core_type = #tpu.core_type<tc>, window_params = [{transform_indices = @transform_0, window_bounds = array<i64: 1, 16, 256>}, {pipeline_mode = #tpu.pipeline_mode<synchronous>, transform_indices = @transform_1, window_bounds = array<i64: 256, 32>}, {transform_indices = @transform_2, window_bounds = array<i64: 1, 16, 32>}]} {
    %c0 = arith.constant 0 : index
    %c0_0 = arith.constant 0 : index
    %c0_1 = arith.constant 0 : index
    %0 = vector.load %arg1[%c0, %c0_0, %c0_1] : memref<1x16x256xbf16, #tpu.memory_space<vmem>>, vector<1x16x256xbf16>
    %1 = vector.shape_cast %0 : vector<1x16x256xbf16> to vector<16x256xbf16>
    %c0_2 = arith.constant 0 : index
    %c0_3 = arith.constant 0 : index
    %2 = vector.load %arg2[%c0_2, %c0_3] : memref<256x32xbf16, #tpu.memory_space<vmem>>, vector<256x32xbf16>
    %cst = arith.constant dense<0.000000e+00> : vector<16x32xf32>
    %3 = tpu.matmul %1, %2, %cst {dimension_numbers = #tpu.dot_dimension_numbers<[1], [0], [0], [1], [0, 0, 1, 1], [], []>} : vector<16x256xbf16>, vector<256x32xbf16>, vector<16x32xf32> -> vector<16x32xf32>
    %cst_4 = arith.constant dense<0.000000e+00> : vector<32xf32>
    %4 = vector.multi_reduction <add>, %3, %cst_4 [0] : vector<16x32xf32> to vector<32xf32>
    %5 = vector.shape_cast %4 : vector<32xf32> to vector<1x32xf32>
    %cst_5 = arith.constant 1.600000e+01 : f32
    %6 = vector.broadcast %cst_5 : f32 to vector<1x32xf32>
    %7 = arith.divf %5, %6 : vector<1x32xf32>
    %8 = vector.broadcast %7 : vector<1x32xf32> to vector<16x32xf32>
    %9 = arith.subf %3, %8 : vector<16x32xf32>
    %10 = arith.mulf %9, %9 : vector<16x32xf32>
    %cst_6 = arith.constant dense<0.000000e+00> : vector<32xf32>
    %11 = vector.multi_reduction <add>, %10, %cst_6 [0] : vector<16x32xf32> to vector<32xf32>
    %12 = vector.shape_cast %11 : vector<32xf32> to vector<1x32xf32>
    %cst_7 = arith.constant 1.600000e+01 : f32
    %13 = vector.broadcast %cst_7 : f32 to vector<1x32xf32>
    %14 = arith.divf %12, %13 : vector<1x32xf32>
    %cst_8 = arith.constant 9.99999974E-6 : f32
    %15 = vector.broadcast %cst_8 : f32 to vector<1x32xf32>
    %16 = arith.addf %14, %15 : vector<1x32xf32>
    %17 = math.rsqrt %16 : vector<1x32xf32>
    %18 = vector.broadcast %17 : vector<1x32xf32> to vector<16x32xf32>
    %19 = arith.mulf %9, %18 : vector<16x32xf32>
    %cst_9 = arith.constant 0.000000e+00 : f32
    %20 = vector.broadcast %cst_9 : f32 to vector<16x32xf32>
    %21 = arith.cmpf oge, %19, %20 : vector<16x32xf32>
    %cst_10 = arith.constant 2.000000e-01 : f32
    %22 = vector.broadcast %cst_10 : f32 to vector<16x32xf32>
    %23 = arith.mulf %22, %19 : vector<16x32xf32>
    %24 = arith.select %21, %19, %23 : vector<16x32xi1>, vector<16x32xf32>
    %25 = arith.truncf %24 : vector<16x32xf32> to vector<16x32xbf16>
    %c0_11 = arith.constant 0 : index
    %c0_12 = arith.constant 0 : index
    %c0_13 = arith.constant 0 : index
    %26 = vector.load %arg3[%c0_11, %c0_12, %c0_13] : memref<1x16x32xbf16, #tpu.memory_space<vmem>>, vector<1x16x32xbf16>
    %27 = vector.shape_cast %26 : vector<1x16x32xbf16> to vector<16x32xbf16>
    %28 = vector.shape_cast %25 : vector<16x32xbf16> to vector<1x16x32xbf16>
    tpu.vector_store %arg3[%c0_11, %c0_12, %c0_13], %28 {strides = array<i32>} : memref<1x16x32xbf16, #tpu.memory_space<vmem>>, vector<1x16x32xbf16>,
    return
  }
  func.func @transform_0(%arg0: i32) -> (i32, i32, i32) {
    %c0_i32 = arith.constant 0 : i32
    %c0_i32_0 = arith.constant 0 : i32
    %c0_i32_1 = arith.constant 0 : i32
    return %arg0, %c0_i32, %c0_i32_0 : i32, i32, i32
  }
  func.func @transform_1(%arg0: i32) -> (i32, i32) {
    %c0_i32 = arith.constant 0 : i32
    %c0_i32_0 = arith.constant 0 : i32
    %c0_i32_1 = arith.constant 0 : i32
    return %c0_i32, %c0_i32_0 : i32, i32
  }
  func.func @transform_2(%arg0: i32) -> (i32, i32, i32) {
    %c0_i32 = arith.constant 0 : i32
    %c0_i32_0 = arith.constant 0 : i32
    %c0_i32_1 = arith.constant 0 : i32
    return %arg0, %c0_i32, %c0_i32_0 : i32, i32, i32
  }
}

module attributes {stable_mosaic.version = 11 : i64} {
  func.func @_fused_block_kernel(%arg0: i32, %arg1: memref<1x4x512xbf16, #tpu.memory_space<vmem>>, %arg2: memref<512x64xbf16, #tpu.memory_space<vmem>>, %arg3: memref<1x4x64xbf16, #tpu.memory_space<vmem>>) attributes {dimension_semantics = [#tpu.dimension_semantics<parallel>], iteration_bounds = array<i64: 2>, scalar_prefetch = 0 : i64, scratch_operands = 0 : i64, tpu.core_type = #tpu.core_type<tc>, window_params = [{transform_indices = @transform_0, window_bounds = array<i64: 1, 4, 512>}, {pipeline_mode = #tpu.pipeline_mode<synchronous>, transform_indices = @transform_1, window_bounds = array<i64: 512, 64>}, {transform_indices = @transform_2, window_bounds = array<i64: 1, 4, 64>}]} {
    %c0 = arith.constant 0 : index
    %c0_0 = arith.constant 0 : index
    %c0_1 = arith.constant 0 : index
    %0 = vector.load %arg1[%c0, %c0_0, %c0_1] : memref<1x4x512xbf16, #tpu.memory_space<vmem>>, vector<1x4x512xbf16>
    %1 = vector.shape_cast %0 : vector<1x4x512xbf16> to vector<4x512xbf16>
    %c0_2 = arith.constant 0 : index
    %c0_3 = arith.constant 0 : index
    %2 = vector.load %arg2[%c0_2, %c0_3] : memref<512x64xbf16, #tpu.memory_space<vmem>>, vector<512x64xbf16>
    %cst = arith.constant dense<0.000000e+00> : vector<4x64xf32>
    %3 = tpu.matmul %1, %2, %cst {dimension_numbers = #tpu.dot_dimension_numbers<[1], [0], [0], [1], [0, 0, 1, 1], [], []>} : vector<4x512xbf16>, vector<512x64xbf16>, vector<4x64xf32> -> vector<4x64xf32>
    %cst_4 = arith.constant dense<0.000000e+00> : vector<64xf32>
    %4 = vector.multi_reduction <add>, %3, %cst_4 [0] : vector<4x64xf32> to vector<64xf32>
    %5 = vector.shape_cast %4 : vector<64xf32> to vector<1x64xf32>
    %cst_5 = arith.constant 4.000000e+00 : f32
    %6 = vector.broadcast %cst_5 : f32 to vector<1x64xf32>
    %7 = arith.divf %5, %6 : vector<1x64xf32>
    %8 = vector.broadcast %7 : vector<1x64xf32> to vector<4x64xf32>
    %9 = arith.subf %3, %8 : vector<4x64xf32>
    %10 = arith.mulf %9, %9 : vector<4x64xf32>
    %cst_6 = arith.constant dense<0.000000e+00> : vector<64xf32>
    %11 = vector.multi_reduction <add>, %10, %cst_6 [0] : vector<4x64xf32> to vector<64xf32>
    %12 = vector.shape_cast %11 : vector<64xf32> to vector<1x64xf32>
    %cst_7 = arith.constant 4.000000e+00 : f32
    %13 = vector.broadcast %cst_7 : f32 to vector<1x64xf32>
    %14 = arith.divf %12, %13 : vector<1x64xf32>
    %cst_8 = arith.constant 9.99999974E-6 : f32
    %15 = vector.broadcast %cst_8 : f32 to vector<1x64xf32>
    %16 = arith.addf %14, %15 : vector<1x64xf32>
    %17 = math.rsqrt %16 : vector<1x64xf32>
    %18 = vector.broadcast %17 : vector<1x64xf32> to vector<4x64xf32>
    %19 = arith.mulf %9, %18 : vector<4x64xf32>
    %cst_9 = arith.constant 0.000000e+00 : f32
    %20 = vector.broadcast %cst_9 : f32 to vector<4x64xf32>
    %21 = arith.cmpf oge, %19, %20 : vector<4x64xf32>
    %cst_10 = arith.constant 2.000000e-01 : f32
    %22 = vector.broadcast %cst_10 : f32 to vector<4x64xf32>
    %23 = arith.mulf %22, %19 : vector<4x64xf32>
    %24 = arith.select %21, %19, %23 : vector<4x64xi1>, vector<4x64xf32>
    %25 = arith.truncf %24 : vector<4x64xf32> to vector<4x64xbf16>
    %c0_11 = arith.constant 0 : index
    %c0_12 = arith.constant 0 : index
    %c0_13 = arith.constant 0 : index
    %26 = vector.load %arg3[%c0_11, %c0_12, %c0_13] : memref<1x4x64xbf16, #tpu.memory_space<vmem>>, vector<1x4x64xbf16>
    %27 = vector.shape_cast %26 : vector<1x4x64xbf16> to vector<4x64xbf16>
    %28 = vector.shape_cast %25 : vector<4x64xbf16> to vector<1x4x64xbf16>
    tpu.vector_store %arg3[%c0_11, %c0_12, %c0_13], %28 {strides = array<i32>} : memref<1x4x64xbf16, #tpu.memory_space<vmem>>, vector<1x4x64xbf16>,
    return
  }
  func.func @transform_0(%arg0: i32) -> (i32, i32, i32) {
    %c0_i32 = arith.constant 0 : i32
    %c0_i32_0 = arith.constant 0 : i32
    %c0_i32_1 = arith.constant 0 : i32
    return %arg0, %c0_i32, %c0_i32_0 : i32, i32, i32
  }
  func.func @transform_1(%arg0: i32) -> (i32, i32) {
    %c0_i32 = arith.constant 0 : i32
    %c0_i32_0 = arith.constant 0 : i32
    %c0_i32_1 = arith.constant 0 : i32
    return %c0_i32, %c0_i32_0 : i32, i32
  }
  func.func @transform_2(%arg0: i32) -> (i32, i32, i32) {
    %c0_i32 = arith.constant 0 : i32
    %c0_i32_0 = arith.constant 0 : i32
    %c0_i32_1 = arith.constant 0 : i32
    return %arg0, %c0_i32, %c0_i32_0 : i32, i32, i32
  }
}

module attributes {stable_mosaic.version = 11 : i64} {
  func.func @_fused_block_kernel(%arg0: i32, %arg1: memref<1x1x1024xbf16, #tpu.memory_space<vmem>>, %arg2: memref<1024x1xbf16, #tpu.memory_space<vmem>>, %arg3: memref<1x1xf32, #tpu.memory_space<vmem>>, %arg4: memref<1x1x1xf32, #tpu.memory_space<vmem>>) attributes {dimension_semantics = [#tpu.dimension_semantics<parallel>], iteration_bounds = array<i64: 2>, scalar_prefetch = 0 : i64, scratch_operands = 0 : i64, tpu.core_type = #tpu.core_type<tc>, window_params = [{transform_indices = @transform_0, window_bounds = array<i64: 1, 1, 1024>}, {pipeline_mode = #tpu.pipeline_mode<synchronous>, transform_indices = @transform_1, window_bounds = array<i64: 1024, 1>}, {pipeline_mode = #tpu.pipeline_mode<synchronous>, transform_indices = @transform_2, window_bounds = array<i64: 1, 1>}, {transform_indices = @transform_3, window_bounds = array<i64: 1, 1, 1>}]} {
    %c0 = arith.constant 0 : index
    %c0_0 = arith.constant 0 : index
    %c0_1 = arith.constant 0 : index
    %0 = vector.load %arg1[%c0, %c0_0, %c0_1] : memref<1x1x1024xbf16, #tpu.memory_space<vmem>>, vector<1x1x1024xbf16>
    %1 = vector.shape_cast %0 : vector<1x1x1024xbf16> to vector<1x1024xbf16>
    %c0_2 = arith.constant 0 : index
    %c0_3 = arith.constant 0 : index
    %2 = vector.load %arg2[%c0_2, %c0_3] : memref<1024x1xbf16, #tpu.memory_space<vmem>>, vector<1024x1xbf16>
    %cst = arith.constant dense<0.000000e+00> : vector<1x1xf32>
    %3 = tpu.matmul %1, %2, %cst {dimension_numbers = #tpu.dot_dimension_numbers<[1], [0], [0], [1], [0, 0, 1, 1], [], []>} : vector<1x1024xbf16>, vector<1024x1xbf16>, vector<1x1xf32> -> vector<1x1xf32>
    %c0_4 = arith.constant 0 : index
    %c0_5 = arith.constant 0 : index
    %4 = vector.load %arg3[%c0_4, %c0_5] : memref<1x1xf32, #tpu.memory_space<vmem>>, vector<1x1xf32>
    %5 = arith.addf %3, %4 : vector<1x1xf32>
    %c0_6 = arith.constant 0 : index
    %c0_7 = arith.constant 0 : index
    %c0_8 = arith.constant 0 : index
    %6 = vector.load %arg4[%c0_6, %c0_7, %c0_8] : memref<1x1x1xf32, #tpu.memory_space<vmem>>, vector<1x1x1xf32>
    %7 = vector.shape_cast %6 : vector<1x1x1xf32> to vector<1x1xf32>
    %8 = vector.shape_cast %5 : vector<1x1xf32> to vector<1x1x1xf32>
    tpu.vector_store %arg4[%c0_6, %c0_7, %c0_8], %8 {strides = array<i32>} : memref<1x1x1xf32, #tpu.memory_space<vmem>>, vector<1x1x1xf32>,
    return
  }
  func.func @transform_0(%arg0: i32) -> (i32, i32, i32) {
    %c0_i32 = arith.constant 0 : i32
    %c0_i32_0 = arith.constant 0 : i32
    %c0_i32_1 = arith.constant 0 : i32
    return %arg0, %c0_i32, %c0_i32_0 : i32, i32, i32
  }
  func.func @transform_1(%arg0: i32) -> (i32, i32) {
    %c0_i32 = arith.constant 0 : i32
    %c0_i32_0 = arith.constant 0 : i32
    %c0_i32_1 = arith.constant 0 : i32
    return %c0_i32, %c0_i32_0 : i32, i32
  }
  func.func @transform_2(%arg0: i32) -> (i32, i32) {
    %c0_i32 = arith.constant 0 : i32
    %c0_i32_0 = arith.constant 0 : i32
    %c0_i32_1 = arith.constant 0 : i32
    return %c0_i32, %c0_i32_0 : i32, i32
  }
  func.func @transform_3(%arg0: i32) -> (i32, i32, i32) {
    %c0_i32 = arith.constant 0 : i32
    %c0_i32_0 = arith.constant 0 : i32
    %c0_i32_1 = arith.constant 0 : i32
    return %arg0, %c0_i32, %c0_i32_0 : i32, i32, i32
  }
}

</mosaic_0001>

<bundles_post_ra>
// kernel: discriminator_forward.5
= control target key start
LH: loop header
LB: loop body
LE: loop exit
PB: predicated region body
PF: predicated region fallthrough
CT: control target
= control target key end

     0   :  { %s1038_s12 = smov 0   ;;  %s1204_s0 = inlined_call_operand.vmem [shape: bf16[2,256,16], index: 0, kind: input, shape index: {}]   ;;  %s1205_s1 = inlined_call_operand.vmem [shape: bf16[16,8], index: 1, kind: input, shape index: {}]   ;;  %s1206_s2 = inlined_call_operand.vmem [shape: f32[1,8], index: 2, kind: input, shape index: {}]   ;;  %s1207_s3 = inlined_call_operand.vmem [shape: bf16[2,256,8], index: 3, kind: output, shape index: {}]  }
   0x1 LB: > { %s821_s13 = sadd.s32 4294967295, %s1016_s12   ;;  %p825_p0 = scmp.ge.s32.totalorder %s1016_s12, 1  ;;  %s1016_s12 = sphi %s1038_s12, %s13_s12  }
   0x2   : > { %p137_p1 = scmp.lt.s32.totalorder %s1016_s12, 3 }
   0x4   : > { %p138_p2 = pnand %p825_p0, %p137_p1 }
   0x5   : > { %v993_v0 = vld [vmem:[%s1205_s1] sm:$0xff] (!%p138_p2)   ;;  %p161_p3 = scmp.lt.s32.totalorder (!%p138_p2), %s821_s13, 1  ;;  %vm299_vm0 = vcmask (!%p138_p2), 130048   ;;  %vm733_vm1 = vcmask (!%p138_p2), 60416  }
   0x6   : > { %141 = sbr.rel (%p138_p2) target bundleno = 276 (0x114), region = 32  ;;  %949 = vmatprep.subr.bf16.mxu0 (!%p138_p2), %v993_v0  ;;  %983 = vmatprep.subr.bf16.mxu1 (!%p138_p2), %v993_v0  ;;  %v1094_v17 = vld [vmem:[%s1206_s2] ss:$0 sm:$0xff] (!%p138_p2) }
   0x7   : > { %950 = vmatpush3.bf16.msra.mxu0 (!%p138_p2), %v993_v0  ;;  %984 = vmatpush3.bf16.msra.mxu1 (!%p138_p2), %v993_v0 }
   0xd   : > { %s1209_s13 = smov (!%p161_p3, %s821_s13), 1 }
   0xe   : > { %s898_s16 = sshll.u32 %s1209_s13, 7 }
   0xf   : > { %s1057_s19 = scalar_lea.vmem %s1204_s0, %s898_s16  ;;  %s1106_s24 = scalar_lea.vmem %s1207_s3, %s898_s16 }
  0x10   : > { %v994_v1 = vld [vmem:[%s1057_s19] sm:$0xff]   ;;  %v996_v3 = vld [vmem:[%s1057_s19 + $0x8] sm:$0xff]   ;;  %v998_v5 = vld [vmem:[%s1057_s19 + $0x10] sm:$0xff]  }
  0x11   : > { %v995_v2 = vld [vmem:[%s1057_s19 + $0x40] sm:$0xff]   ;;  %951 = vmatprep.mubr.msk.bf16.mxu0 %vm299_vm0, %v994_v1  ;;  %v997_v4 = vld [vmem:[%s1057_s19 + $0x48] sm:$0xff]   ;;  %v999_v6 = vld [vmem:[%s1057_s19 + $0x50] sm:$0xff]  }
  0x12   : > { %967 = vmatprep.mubr.msk.bf16.mxu1 %vm299_vm0, %v995_v2  ;;  %952 = vmatmul.mubr.msk.bf16.vlgmr.msra.gmra.mrb[0].mxu0 %vm299_vm0, %v996_v3  ;;  %v1000_v7 = vld [vmem:[%s1057_s19 + $0x18] sm:$0xff]   ;;  %v1002_v9 = vld [vmem:[%s1057_s19 + $0x20] sm:$0xff]   ;;  %v1004_v11 = vld [vmem:[%s1057_s19 + $0x28] sm:$0xff]  }
  0x13   : > { %968 = vmatmul.mubr.msk.bf16.vlgmr.msra.gmra.mrb[0].mxu1 %vm299_vm0, %v997_v4  ;;  %955 = vmatprep.mubr.msk.bf16.mxu0 %vm299_vm0, %v998_v5  ;;  %v1001_v8 = vld [vmem:[%s1057_s19 + $0x58] sm:$0xff]   ;;  %v1003_v10 = vld [vmem:[%s1057_s19 + $0x60] sm:$0xff]   ;;  %v1005_v12 = vld [vmem:[%s1057_s19 + $0x68] sm:$0xff]  }
  0x14   : > { %971 = vmatprep.mubr.msk.bf16.mxu1 %vm299_vm0, %v999_v6  ;;  %v1006_v13 = vld [vmem:[%s1057_s19 + $0x30] sm:$0xff]   ;;  %v1008_v15 = vld [vmem:[%s1057_s19 + $0x38] sm:$0xff]  }
  0x15   : > { %v1007_v14 = vld [vmem:[%s1057_s19 + $0x70] sm:$0xff]   ;;  %v1009_v16 = vld [vmem:[%s1057_s19 + $0x78] sm:$0xff]  }
  0x1a   : > { %956 = vmatmul.mubr.msk.bf16.gmra.mrb[4].mxu0 %vm299_vm0, %v1000_v7 }
  0x1b   : > { %972 = vmatmul.mubr.msk.bf16.gmra.mrb[4].mxu1 %vm299_vm0, %v1001_v8  ;;  %959 = vmatprep.mubr.msk.bf16.mxu0 %vm299_vm0, %v1002_v9 }
  0x1c   : > { %975 = vmatprep.mubr.msk.bf16.mxu1 %vm299_vm0, %v1003_v10 }
  0x22   : > { %960 = vmatmul.mubr.msk.bf16.gmra.mrb[8].mxu0 %vm299_vm0, %v1004_v11 }
  0x23   : > { %976 = vmatmul.mubr.msk.bf16.gmra.mrb[8].mxu1 %vm299_vm0, %v1005_v12  ;;  %963 = vmatprep.mubr.msk.bf16.mxu0 %vm299_vm0, %v1006_v13 }
  0x24   : > { %979 = vmatprep.mubr.msk.bf16.mxu1 %vm299_vm0, %v1007_v14 }
  0x2a   : > { %964 = vmatmul.mubr.msk.bf16.gmra.mrb[12].mxu0 %vm299_vm0, %v1008_v15 }
  0x2b   : > { %980 = vmatmul.mubr.msk.bf16.gmra.mrb[12].mxu1 %vm299_vm0, %v1009_v16 }
  0xe5   : > { %v953_v18 = vpop.f32.mrb[0].mxu0 }
  0xe6   : > { %v391_v19 = vadd.f32 %v953_v18, %v1094_v17  ;;  %v969_v20 = vpop.f32.mrb[0].mxu1  ;;  %v382_v21 = vpop.f32.mrb[1].mxu0 }
  0xe7   : > { %v455_v22 = vadd.f32 %v969_v20, %v1094_v17  ;;  %v383_v23 = vadd.f32 %v1094_v17, %v382_v21  ;;  %v446_v24 = vpop.f32.mrb[1].mxu1  ;;  %v954_v25 = vpop.f32.mrb[2].mxu0 }
  0xe8   : > { %vm511_vm2 = vcmp.ge.f32.partialorder %v391_v19, 0.0  ;;  %v543_v26 = vmul.f32 0.2, %v391_v19  ;;  %v447_v27 = vadd.f32 %v1094_v17, %v446_v24  ;;  %v394_v28 = vadd.f32 %v954_v25, %v1094_v17  ;;  %v970_v29 = vpop.f32.mrb[2].mxu1  ;;  %v385_v30 = vpop.f32.mrb[3].mxu0 }
  0xe9   : > { %vm527_vm3 = vcmp.ge.f32.partialorder %v455_v22, 0.0  ;;  %v559_v31 = vmul.f32 0.2, %v455_v22  ;;  %vm509_vm4 = vcmp.ge.f32.partialorder %v383_v23, 0.0  ;;  %v541_v32 = vmul.f32 0.2, %v383_v23 }
  0xea   : > { %v575_v33 = vsel %vm511_vm2, %v391_v19, %v543_v26  ;;  %vm525_vm5 = vcmp.ge.f32.partialorder %v447_v27, 0.0  ;;  %v557_v34 = vmul.f32 0.2, %v447_v27  ;;  %vm512_vm6 = vcmp.ge.f32.partialorder %v394_v28, 0.0  ;;  %v449_v35 = vpop.f32.mrb[3].mxu1 }
  0xeb   : > { %v902_v36 = vpack.c.bf16 %v575_v33, %v575_v33  ;;  %v591_v37 = vsel %vm527_vm3, %v455_v22, %v559_v31  ;;  %v573_v38 = vsel %vm509_vm4, %v383_v23, %v541_v32  ;;  %v544_v39 = vmul.f32 0.2, %v394_v28 }
  0xec   : > { %v918_v40 = vpack.c.bf16 %v591_v37, %v591_v37  ;;  %v900_v41 = vpack.c.bf16 %v573_v38, %v573_v38  ;;  %v589_v42 = vsel %vm525_vm5, %v447_v27, %v557_v34  ;;  %v458_v43 = vadd.f32 %v970_v29, %v1094_v17 }
  0xed   : > { %736 = vst.msk [vmem:[%s1106_s24 + $0x8] sm:$0xf] %vm733_vm1, %v902_v36  ;;  %v916_v44 = vpack.c.bf16 %v589_v42, %v589_v42  ;;  %v576_v45 = vsel %vm512_vm6, %v394_v28, %v544_v39  ;;  %v386_v46 = vadd.f32 %v1094_v17, %v385_v30  ;;  %v450_v47 = vadd.f32 %v1094_v17, %v449_v35  ;;  %v957_v48 = vpop.f32.mrb[4].mxu0 }
  0xee   : > { %752 = vst.msk [vmem:[%s1106_s24 + $0x48] sm:$0xf] %vm733_vm1, %v918_v40  ;;  %734 = vst.msk [vmem:[%s1106_s24] sm:$0xf] %vm733_vm1, %v900_v41  ;;  %v903_v49 = vpack.c.bf16 %v576_v45, %v576_v45  ;;  %vm528_vm7 = vcmp.ge.f32.partialorder %v458_v43, 0.0  ;;  %v407_v51 = vadd.f32 %v957_v48, %v1094_v17  ;;  %v973_v52 = vpop.f32.mrb[4].mxu1 }
  0xef   : > { %v560_v50 = vmul.f32 0.2, %v458_v43  ;;  %v398_v53 = vpop.f32.mrb[5].mxu0  ;;  %750 = vst.msk [vmem:[%s1106_s24 + $0x40] sm:$0xf] %vm733_vm1, %v916_v44  ;;  %vm510_vm8 = vcmp.ge.f32.partialorder %v386_v46, 0.0  ;;  %v471_v58 = vadd.f32 %v973_v52, %v1094_v17 }
  0xf0   : > { %v542_v54 = vmul.f32 0.2, %v386_v46  ;;  %vm526_vm9 = vcmp.ge.f32.partialorder %v450_v47, 0.0  ;;  %v558_v55 = vmul.f32 0.2, %v450_v47  ;;  %vm515_vm10 = vcmp.ge.f32.partialorder %v407_v51, 0.0 }
  0xf1   : > { %737 = vst.msk [vmem:[%s1106_s24 + $0xc] sm:$0xf] %vm733_vm1, %v903_v49  ;;  %v592_v56 = vsel %vm528_vm7, %v458_v43, %v560_v50  ;;  %v547_v57 = vmul.f32 0.2, %v407_v51  ;;  %v462_v59 = vpop.f32.mrb[5].mxu1  ;;  %v958_v60 = vpop.f32.mrb[6].mxu0  ;;  %v399_v0 = vadd.f32 %v1094_v17, %v398_v53 }
  0xf2   : > { %v919_v61 = vpack.c.bf16 %v592_v56, %v592_v56  ;;  %v574_v62 = vsel %vm510_vm8, %v386_v46, %v542_v54  ;;  %v590_v63 = vsel %vm526_vm9, %v450_v47, %v558_v55  ;;  %v974_v1 = vpop.f32.mrb[6].mxu1  ;;  %v401_v2 = vpop.f32.mrb[7].mxu0  ;;  %vm531_vm11 = vcmp.ge.f32.partialorder %v471_v58, 0.0 }
  0xf3   : > { %v901_v3 = vpack.c.bf16 %v574_v62, %v574_v62  ;;  %v917_v4 = vpack.c.bf16 %v590_v63, %v590_v63  ;;  %v579_v5 = vsel %vm515_vm10, %v407_v51, %v547_v57  ;;  %v465_v6 = vpop.f32.mrb[7].mxu1  ;;  %v563_v8 = vmul.f32 0.2, %v471_v58 }
  0xf4   : > { %753 = vst.msk [vmem:[%s1106_s24 + $0x4c] sm:$0xf] %vm733_vm1, %v919_v61  ;;  %v906_v7 = vpack.c.bf16 %v579_v5, %v579_v5  ;;  %vm513_vm12 = vcmp.ge.f32.partialorder %v399_v0, 0.0  ;;  %v545_v9 = vmul.f32 0.2, %v399_v0  ;;  %v463_v10 = vadd.f32 %v1094_v17, %v462_v59 }
  0xf5   : > { %735 = vst.msk [vmem:[%s1106_s24 + $0x4] sm:$0xf] %vm733_vm1, %v901_v3  ;;  %751 = vst.msk [vmem:[%s1106_s24 + $0x44] sm:$0xf] %vm733_vm1, %v917_v4  ;;  %v410_v11 = vadd.f32 %v958_v60, %v1094_v17  ;;  %v474_v12 = vadd.f32 %v974_v1, %v1094_v17  ;;  %v402_v13 = vadd.f32 %v1094_v17, %v401_v2  ;;  %v961_v18 = vpop.f32.mrb[8].mxu0 }
  0xf6   : > { %740 = vst.msk [vmem:[%s1106_s24 + $0x18] sm:$0xf] %vm733_vm1, %v906_v7  ;;  %v595_v14 = vsel %vm531_vm11, %v471_v58, %v563_v8  ;;  %v577_v15 = vsel %vm513_vm12, %v399_v0, %v545_v9  ;;  %v466_v16 = vadd.f32 %v1094_v17, %v465_v6  ;;  %vm529_vm13 = vcmp.ge.f32.partialorder %v463_v10, 0.0  ;;  %v977_v22 = vpop.f32.mrb[8].mxu1  ;;  %v414_v23 = vpop.f32.mrb[9].mxu0 }
  0xf7   : > { %v922_v19 = vpack.c.bf16 %v595_v14, %v595_v14  ;;  %v904_v20 = vpack.c.bf16 %v577_v15, %v577_v15  ;;  %v561_v21 = vmul.f32 0.2, %v463_v10  ;;  %vm516_vm14 = vcmp.ge.f32.partialorder %v410_v11, 0.0  ;;  %v478_v28 = vpop.f32.mrb[9].mxu1  ;;  %v962_v29 = vpop.f32.mrb[10].mxu0 }
  0xf8   : > { %v548_v24 = vmul.f32 0.2, %v410_v11  ;;  %vm532_vm15 = vcmp.ge.f32.partialorder %v474_v12, 0.0  ;;  %v564_v25 = vmul.f32 0.2, %v474_v12  ;;  %vm514_vm0 = vcmp.ge.f32.partialorder %v402_v13, 0.0 }
  0xf9   : > { %756 = vst.msk [vmem:[%s1106_s24 + $0x58] sm:$0xf] %vm733_vm1, %v922_v19  ;;  %738 = vst.msk [vmem:[%s1106_s24 + $0x10] sm:$0xf] %vm733_vm1, %v904_v20  ;;  %v593_v26 = vsel %vm529_vm13, %v463_v10, %v561_v21  ;;  %v546_v27 = vmul.f32 0.2, %v402_v13  ;;  %v423_v39 = vadd.f32 %v961_v18, %v1094_v17  ;;  %v487_v43 = vadd.f32 %v977_v22, %v1094_v17 }
  0xfa   : > { %vm530_vm2 = vcmp.ge.f32.partialorder %v466_v16, 0.0  ;;  %v920_v30 = vpack.c.bf16 %v593_v26, %v593_v26  ;;  %v580_v31 = vsel %vm516_vm14, %v410_v11, %v548_v24  ;;  %v596_v32 = vsel %vm532_vm15, %v474_v12, %v564_v25  ;;  %v978_v34 = vpop.f32.mrb[10].mxu1  ;;  %v417_v35 = vpop.f32.mrb[11].mxu0 }
  0xfb   : > { %v562_v33 = vmul.f32 0.2, %v466_v16  ;;  %v907_v36 = vpack.c.bf16 %v580_v31, %v580_v31  ;;  %v923_v37 = vpack.c.bf16 %v596_v32, %v596_v32  ;;  %v578_v38 = vsel %vm514_vm0, %v402_v13, %v546_v27  ;;  %v481_v40 = vpop.f32.mrb[11].mxu1 }
  0xfc   : > { %754 = vst.msk [vmem:[%s1106_s24 + $0x50] sm:$0xf] %vm733_vm1, %v920_v30  ;;  %v905_v41 = vpack.c.bf16 %v578_v38, %v578_v38  ;;  %v415_v44 = vadd.f32 %v1094_v17, %v414_v23  ;;  %vm519_vm3 = vcmp.ge.f32.partialorder %v423_v39, 0.0  ;;  %v551_v46 = vmul.f32 0.2, %v423_v39 }
  0xfd   : > { %v594_v42 = vsel %vm530_vm2, %v466_v16, %v562_v33  ;;  %741 = vst.msk [vmem:[%s1106_s24 + $0x1c] sm:$0xf] %vm733_vm1, %v907_v36  ;;  %757 = vst.msk [vmem:[%s1106_s24 + $0x5c] sm:$0xf] %vm733_vm1, %v923_v37  ;;  %v479_v47 = vadd.f32 %v1094_v17, %v478_v28  ;;  %vm535_vm4 = vcmp.ge.f32.partialorder %v487_v43, 0.0  ;;  %v426_v52 = vadd.f32 %v962_v29, %v1094_v17  ;;  %v965_v53 = vpop.f32.mrb[12].mxu0 }
  0xfe   : > { %v921_v45 = vpack.c.bf16 %v594_v42, %v594_v42  ;;  %739 = vst.msk [vmem:[%s1106_s24 + $0x14] sm:$0xf] %vm733_vm1, %v905_v41  ;;  %v567_v48 = vmul.f32 0.2, %v487_v43  ;;  %vm517_vm5 = vcmp.ge.f32.partialorder %v415_v44, 0.0  ;;  %v583_v50 = vsel %vm519_vm3, %v423_v39, %v551_v46  ;;  %v981_v54 = vpop.f32.mrb[12].mxu1 }
  0xff   : > { %v549_v49 = vmul.f32 0.2, %v415_v44  ;;  %vm533_vm6 = vcmp.ge.f32.partialorder %v479_v47, 0.0  ;;  %v565_v51 = vmul.f32 0.2, %v479_v47  ;;  %v910_v55 = vpack.c.bf16 %v583_v50, %v583_v50  ;;  %v430_v59 = vpop.f32.mrb[13].mxu0 }
 0x100   : > { %755 = vst.msk [vmem:[%s1106_s24 + $0x54] sm:$0xf] %vm733_vm1, %v921_v45  ;;  %v599_v56 = vsel %vm535_vm4, %v487_v43, %v567_v48  ;;  %v490_v58 = vadd.f32 %v978_v34, %v1094_v17  ;;  %v494_v60 = vpop.f32.mrb[13].mxu1  ;;  %vm520_vm7 = vcmp.ge.f32.partialorder %v426_v52, 0.0  ;;  %v966_v0 = vpop.f32.mrb[14].mxu0  ;;  %v418_v6 = vadd.f32 %v1094_v17, %v417_v35 }
 0x101   : > { %v581_v57 = vsel %vm517_vm5, %v415_v44, %v549_v49  ;;  %v926_v61 = vpack.c.bf16 %v599_v56, %v599_v56  ;;  %v597_v63 = vsel %vm533_vm6, %v479_v47, %v565_v51  ;;  %v982_v1 = vpop.f32.mrb[14].mxu1  ;;  %744 = vst.msk [vmem:[%s1106_s24 + $0x28] sm:$0xf] %vm733_vm1, %v910_v55  ;;  %v552_v3 = vmul.f32 0.2, %v426_v52  ;;  %v433_v5 = vpop.f32.mrb[15].mxu0 }
 0x102   : > { %v908_v62 = vpack.c.bf16 %v581_v57, %v581_v57  ;;  %v924_v2 = vpack.c.bf16 %v597_v63, %v597_v63  ;;  %vm536_vm8 = vcmp.ge.f32.partialorder %v490_v58, 0.0  ;;  %v568_v4 = vmul.f32 0.2, %v490_v58  ;;  %v497_v10 = vpop.f32.mrb[15].mxu1 }
 0x103   : > { %760 = vst.msk [vmem:[%s1106_s24 + $0x68] sm:$0xf] %vm733_vm1, %v926_v61  ;;  %v482_v7 = vadd.f32 %v1094_v17, %v481_v40  ;;  %v439_v8 = vadd.f32 %v965_v53, %v1094_v17  ;;  %v503_v9 = vadd.f32 %v981_v54, %v1094_v17  ;;  %v584_v11 = vsel %vm520_vm7, %v426_v52, %v552_v3 }
 0x104   : > { %742 = vst.msk [vmem:[%s1106_s24 + $0x20] sm:$0xf] %vm733_vm1, %v908_v62  ;;  %758 = vst.msk [vmem:[%s1106_s24 + $0x60] sm:$0xf] %vm733_vm1, %v924_v2  ;;  %v600_v12 = vsel %vm536_vm8, %v490_v58, %v568_v4  ;;  %v431_v13 = vadd.f32 %v1094_v17, %v430_v59  ;;  %v495_v14 = vadd.f32 %v1094_v17, %v494_v60  ;;  %vm518_vm9 = vcmp.ge.f32.partialorder %v418_v6, 0.0 }
 0x105   : > { %v911_v15 = vpack.c.bf16 %v584_v11, %v584_v11  ;;  %v927_v16 = vpack.c.bf16 %v600_v12, %v600_v12  ;;  %v550_v18 = vmul.f32 0.2, %v418_v6  ;;  %vm534_vm10 = vcmp.ge.f32.partialorder %v482_v7, 0.0 }
 0x106   : > { %v566_v19 = vmul.f32 0.2, %v482_v7  ;;  %vm523_vm11 = vcmp.ge.f32.partialorder %v439_v8, 0.0  ;;  %v555_v20 = vmul.f32 0.2, %v439_v8  ;;  %vm539_vm12 = vcmp.ge.f32.partialorder %v503_v9, 0.0 }
 0x107   : > { %745 = vst.msk [vmem:[%s1106_s24 + $0x2c] sm:$0xf] %vm733_vm1, %v911_v15  ;;  %761 = vst.msk [vmem:[%s1106_s24 + $0x6c] sm:$0xf] %vm733_vm1, %v927_v16  ;;  %v582_v21 = vsel %vm518_vm9, %v418_v6, %v550_v18  ;;  %v571_v22 = vmul.f32 0.2, %v503_v9  ;;  %v442_v33 = vadd.f32 %v966_v0, %v1094_v17  ;;  %v506_v35 = vadd.f32 %v982_v1, %v1094_v17 }
 0x108   : > { %vm521_vm13 = vcmp.ge.f32.partialorder %v431_v13, 0.0  ;;  %v909_v23 = vpack.c.bf16 %v582_v21, %v582_v21  ;;  %v598_v24 = vsel %vm534_vm10, %v482_v7, %v566_v19  ;;  %v587_v25 = vsel %vm523_vm11, %v439_v8, %v555_v20 }
 0x109   : > { %v553_v26 = vmul.f32 0.2, %v431_v13  ;;  %v925_v27 = vpack.c.bf16 %v598_v24, %v598_v24  ;;  %v914_v28 = vpack.c.bf16 %v587_v25, %v587_v25  ;;  %v603_v29 = vsel %vm539_vm12, %v503_v9, %v571_v22 }
 0x10a   : > { %vm537_vm14 = vcmp.ge.f32.partialorder %v495_v14, 0.0  ;;  %743 = vst.msk [vmem:[%s1106_s24 + $0x24] sm:$0xf] %vm733_vm1, %v909_v23  ;;  %v930_v30 = vpack.c.bf16 %v603_v29, %v603_v29  ;;  %v569_v32 = vmul.f32 0.2, %v495_v14  ;;  %v434_v36 = vadd.f32 %v1094_v17, %v433_v5 }
 0x10b   : > { %v585_v31 = vsel %vm521_vm13, %v431_v13, %v553_v26  ;;  %759 = vst.msk [vmem:[%s1106_s24 + $0x64] sm:$0xf] %vm733_vm1, %v925_v27  ;;  %748 = vst.msk [vmem:[%s1106_s24 + $0x38] sm:$0xf] %vm733_vm1, %v914_v28  ;;  %v498_v37 = vadd.f32 %v1094_v17, %v497_v10  ;;  %vm524_vm15 = vcmp.ge.f32.partialorder %v442_v33, 0.0  ;;  %vm540_vm0 = vcmp.ge.f32.partialorder %v506_v35, 0.0 }
 0x10c   : > { %v912_v34 = vpack.c.bf16 %v585_v31, %v585_v31  ;;  %764 = vst.msk [vmem:[%s1106_s24 + $0x78] sm:$0xf] %vm733_vm1, %v930_v30  ;;  %v601_v38 = vsel %vm537_vm14, %v495_v14, %v569_v32  ;;  %v556_v39 = vmul.f32 0.2, %v442_v33  ;;  %v572_v41 = vmul.f32 0.2, %v506_v35 }
 0x10d   : > { %v928_v40 = vpack.c.bf16 %v601_v38, %v601_v38  ;;  %vm522_vm2 = vcmp.ge.f32.partialorder %v434_v36, 0.0  ;;  %v554_v43 = vmul.f32 0.2, %v434_v36  ;;  %vm538_vm3 = vcmp.ge.f32.partialorder %v498_v37, 0.0 }
 0x10e   : > { %746 = vst.msk [vmem:[%s1106_s24 + $0x30] sm:$0xf] %vm733_vm1, %v912_v34  ;;  %v588_v42 = vsel %vm524_vm15, %v442_v33, %v556_v39  ;;  %v570_v44 = vmul.f32 0.2, %v498_v37  ;;  %v604_v45 = vsel %vm540_vm0, %v506_v35, %v572_v41 }
 0x10f   : > { %762 = vst.msk [vmem:[%s1106_s24 + $0x70] sm:$0xf] %vm733_vm1, %v928_v40  ;;  %v915_v17 = vpack.c.bf16 %v588_v42, %v588_v42  ;;  %v931_v46 = vpack.c.bf16 %v604_v45, %v604_v45  ;;  %v586_v47 = vsel %vm522_vm2, %v434_v36, %v554_v43 }
 0x110   : > { %v602_v48 = vsel %vm538_vm3, %v498_v37, %v570_v44  ;;  %v913_v49 = vpack.c.bf16 %v586_v47, %v586_v47 }
 0x111   : > { %749 = vst.msk [vmem:[%s1106_s24 + $0x3c] sm:$0xf] %vm733_vm1, %v915_v17  ;;  %v929_v50 = vpack.c.bf16 %v602_v48, %v602_v48  ;;  %765 = vst.msk [vmem:[%s1106_s24 + $0x7c] sm:$0xf] %vm733_vm1, %v931_v46 }
 0x112   : > { %747 = vst.msk [vmem:[%s1106_s24 + $0x34] sm:$0xf] %vm733_vm1, %v913_v49 }
 0x113   : > { %763 = vst.msk [vmem:[%s1106_s24 + $0x74] sm:$0xf] %vm733_vm1, %v929_v50 }
 0x114 PF: > { %s13_s12 = sadd.s32 1, %s1016_s12  }
 0x115   : > { %p10_p4 = scmp.ge.s32.totalorder %s13_s12, 4  }
 0x117   :  { %12 = sbr.rel (!%p10_p4) target bundleno = 1 (0x1), region = 62 }

// kernel: discriminator_forward.6
= control target key start
LH: loop header
LB: loop body
LE: loop exit
PB: predicated region body
PF: predicated region fallthrough
CT: control target
= control target key end

     0   :  { %s636_s9 = smov 0   ;;  %s722_s0 = inlined_call_operand.vmem [shape: bf16[2,64,128], index: 0, kind: input, shape index: {}]   ;;  %s723_s1 = inlined_call_operand.vmem [shape: bf16[128,16], index: 1, kind: input, shape index: {}]   ;;  %s724_s2 = inlined_call_operand.vmem [shape: bf16[2,64,16], index: 2, kind: output, shape index: {}]  }
   0x1 LB: > { %s498_s10 = sadd.s32 4294967295, %s619_s9   ;;  %p502_p0 = scmp.ge.s32.totalorder %s619_s9, 1  ;;  %s619_s9 = sphi %s636_s9, %s12_s9  }
   0x2   : > { %p112_p1 = scmp.lt.s32.totalorder %s619_s9, 3 }
   0x4   : > { %p113_p2 = pnand %p502_p0, %p112_p1 }
   0x5   : > { %v599_v0 = vld [vmem:[%s723_s1] sm:$0xff] (!%p113_p2)   ;;  %p134_p3 = scmp.lt.s32.totalorder (!%p113_p2), %s498_s10, 1  ;;  %v600_v1 = vld [vmem:[%s723_s1 + $0x8] sm:$0xff] (!%p113_p2)   ;;  %v601_v2 = vld [vmem:[%s723_s1 + $0x10] sm:$0xff] (!%p113_p2)   ;;  %vm306_vm0 = vcmask (!%p113_p2), 130048   ;;  %vm434_vm1 = vcmask (!%p113_p2), 125952  }
   0x6   : > { %116 = sbr.rel (%p113_p2) target bundleno = 342 (0x156), region = 28  ;;  %551 = vmatprep.subr.bf16.mxu0 (!%p113_p2), %v599_v0  ;;  %575 = vmatprep.subr.bf16.mxu1 (!%p113_p2), %v599_v0  ;;  %v602_v3 = vld [vmem:[%s723_s1 + $0x18] sm:$0xff] (!%p113_p2)   ;;  %v603_v6 = vld [vmem:[%s723_s1 + $0x20] sm:$0xff] (!%p113_p2)   ;;  %v604_v7 = vld [vmem:[%s723_s1 + $0x28] sm:$0xff] (!%p113_p2)  }
   0x7   : > { %552 = vmatpush3.bf16.msra.mxu0 (!%p113_p2), %v599_v0  ;;  %583 = vmatpush3.bf16.msra.mxu1 (!%p113_p2), %v599_v0  ;;  %v605_v8 = vld [vmem:[%s723_s1 + $0x30] sm:$0xff] (!%p113_p2)   ;;  %v606_v9 = vld [vmem:[%s723_s1 + $0x38] sm:$0xff] (!%p113_p2)  }
   0x8   : > { %553 = vmatprep.subr.bf16.mxu0 (!%p113_p2), %v600_v1  ;;  %576 = vmatprep.subr.bf16.mxu1 (!%p113_p2), %v600_v1 }
   0xb   : > { %554 = vmatpush3.bf16.msra.mxu0 (!%p113_p2), %v600_v1  ;;  %584 = vmatpush3.bf16.msra.mxu1 (!%p113_p2), %v600_v1 }
   0xc   : > { %555 = vmatprep.subr.bf16.mxu0 (!%p113_p2), %v601_v2  ;;  %577 = vmatprep.subr.bf16.mxu1 (!%p113_p2), %v601_v2 }
   0xd   : > { %s726_s10 = smov (!%p134_p3, %s498_s10), 1 }
   0xe   : > { %s529_s17 = sshll.u32 %s726_s10, 5 }
   0xf   : > { %s661_s20 = scalar_lea.vmem %s722_s0, %s529_s17  ;;  %556 = vmatpush3.bf16.msra.mxu0 %v601_v2  ;;  %585 = vmatpush3.bf16.msra.mxu1 %v601_v2  ;;  %s143_s5 = scalar_lea.vmem %s724_s2, %s529_s17 }
  0x10   : > { %v607_v4 = vld [vmem:[%s661_s20] sm:$0xff]   ;;  %v609_v5 = vld [vmem:[%s661_s20 + $0x10] sm:$0xff]   ;;  %557 = vmatprep.subr.bf16.mxu0 %v602_v3  ;;  %578 = vmatprep.subr.bf16.mxu1 %v602_v3  ;;  %v608_v10 = vld [vmem:[%s661_s20 + $0x8] sm:$0xff]  }
  0x11   : > { %567 = vmatprep.mubr.bf16.mxu0 %v607_v4  ;;  %571 = vmatprep.mubr.bf16.mxu1 %v609_v5  ;;  %v610_v11 = vld [vmem:[%s661_s20 + $0x18] sm:$0xff]  }
  0x13   : > { %558 = vmatpush3.bf16.msra.mxu0 %v602_v3  ;;  %586 = vmatpush3.bf16.msra.mxu1 %v602_v3 }
  0x14   : > { %559 = vmatprep.subr.bf16.mxu0 %v603_v6  ;;  %579 = vmatprep.subr.bf16.mxu1 %v603_v6 }
  0x17   : > { %560 = vmatpush3.bf16.msra.mxu0 %v603_v6  ;;  %587 = vmatpush3.bf16.msra.mxu1 %v603_v6 }
  0x18   : > { %561 = vmatprep.subr.bf16.mxu0 %v604_v7  ;;  %580 = vmatprep.subr.bf16.mxu1 %v604_v7 }
  0x1b   : > { %562 = vmatpush3.bf16.msra.mxu0 %v604_v7  ;;  %588 = vmatpush3.bf16.msra.mxu1 %v604_v7 }
  0x1c   : > { %563 = vmatprep.subr.bf16.mxu0 %v605_v8  ;;  %581 = vmatprep.subr.bf16.mxu1 %v605_v8 }
  0x1f   : > { %564 = vmatpush3.bf16.msra.mxu0 %v605_v8  ;;  %589 = vmatpush3.bf16.msra.mxu1 %v605_v8 }
  0x20   : > { %565 = vmatprep.subr.bf16.mxu0 %v606_v9  ;;  %582 = vmatprep.subr.bf16.mxu1 %v606_v9 }
  0x23   : > { %566 = vmatpush3.bf16.msra.mxu0 %v606_v9  ;;  %590 = vmatpush3.bf16.msra.mxu1 %v606_v9 }
  0x26   : > { %568 = vmatmul.mubr.bf16.vlgmr.msra.gmra.mrb[0].mxu0 %v608_v10  ;;  %572 = vmatmul.mubr.bf16.vlgmr.msra.gmra.mrb[0].mxu1 %v610_v11 }
  0xf9   : > { %v569_v12 = vpop.f32.mrb[0].mxu0  ;;  %v573_v13 = vpop.f32.mrb[0].mxu1 }
  0xfa   : > { %v275_v14 = vpop.f32.mrb[1].mxu0  ;;  %v291_v15 = vpop.f32.mrb[1].mxu1  ;;  %v310_v23 = vsel %vm306_vm0, %v569_v12, 0.0  ;;  %v318_v31 = vsel %vm306_vm0, %v573_v13, 0.0 }
  0xfb   : > { %v570_v16 = vpop.f32.mrb[2].mxu0  ;;  %v574_v17 = vpop.f32.mrb[2].mxu1  ;;  %v307_v20 = vsel %vm306_vm0, %v275_v14, 0.0  ;;  %v314_v26 = vsel %vm306_vm0, %v291_v15, 0.0 }
  0xfc   : > { %v278_v18 = vpop.f32.mrb[3].mxu0  ;;  %v294_v19 = vpop.f32.mrb[3].mxu1  ;;  %v312_v25 = vsel %vm306_vm0, %v570_v16, 0.0  ;;  %v320_v33 = vsel %vm306_vm0, %v574_v17, 0.0 }
  0xfd   : > { %v308_v21 = vsel %vm306_vm0, %v278_v18, 0.0  ;;  %v316_v29 = vsel %vm306_vm0, %v294_v19, 0.0 }
  0xfe   : > { %v309_v22 = vadd.f32 %v308_v21, %v307_v20 }
 0x100   : > { %v311_v24 = vadd.f32 %v310_v23, %v309_v22 }
 0x102   : > { %v313_v27 = vadd.f32 %v312_v25, %v311_v24 }
 0x104   : > { %v315_v28 = vadd.f32 %v314_v26, %v313_v27 }
 0x106   : > { %v317_v30 = vadd.f32 %v316_v29, %v315_v28 }
 0x108   : > { %v319_v32 = vadd.f32 %v318_v31, %v317_v30 }
 0x10a   : > { %v321_v34 = vadd.f32 %v320_v33, %v319_v32 }
 0x10c   : > { %v322_v35 = vrot.slane %v321_v34, 4 }
 0x10e   : > { %v323_v36 = vadd.f32 %v322_v35, %v321_v34 }
 0x110   : > { %v324_v37 = vrot.slane %v323_v36, 2 }
 0x112   : > { %v325_v38 = vadd.f32 %v324_v37, %v323_v36 }
 0x114   : > { %v326_v39 = vrot.slane %v325_v38, 1 }
 0x116   : > { %v327_v40 = vadd.f32 %v326_v39, %v325_v38 }
 0x118   : > { %v329_v41 = vmul.f32 0.015625, %v327_v40 }
 0x11a   : > { %v330_v42 = vsub.f32 %v275_v14, %v329_v41  ;;  %v331_v43 = vsub.f32 %v278_v18, %v329_v41  ;;  %v332_v44 = vsub.f32 %v569_v12, %v329_v41  ;;  %v333_v45 = vsub.f32 %v570_v16, %v329_v41 }
 0x11b   : > { %v334_v46 = vsub.f32 %v291_v15, %v329_v41  ;;  %v335_v47 = vsub.f32 %v294_v19, %v329_v41  ;;  %v336_v48 = vsub.f32 %v573_v13, %v329_v41  ;;  %v337_v49 = vsub.f32 %v574_v17, %v329_v41 }
 0x11c   : > { %v338_v50 = vmul.f32 %v330_v42, %v330_v42  ;;  %v339_v51 = vmul.f32 %v331_v43, %v331_v43  ;;  %v340_v52 = vmul.f32 %v332_v44, %v332_v44  ;;  %v341_v53 = vmul.f32 %v333_v45, %v333_v45 }
 0x11d   : > { %v342_v57 = vmul.f32 %v334_v46, %v334_v46  ;;  %v343_v60 = vmul.f32 %v335_v47, %v335_v47  ;;  %v344_v63 = vmul.f32 %v336_v48, %v336_v48  ;;  %v345_v2 = vmul.f32 %v337_v49, %v337_v49 }
 0x11e   : > { %v346_v54 = vsel %vm306_vm0, %v338_v50, 0.0  ;;  %v347_v55 = vsel %vm306_vm0, %v339_v51, 0.0  ;;  %v349_v58 = vsel %vm306_vm0, %v340_v52, 0.0  ;;  %v351_v61 = vsel %vm306_vm0, %v341_v53, 0.0 }
 0x11f   : > { %v348_v56 = vadd.f32 %v347_v55, %v346_v54  ;;  %v353_v0 = vsel %vm306_vm0, %v342_v57, 0.0  ;;  %v355_v3 = vsel %vm306_vm0, %v343_v60, 0.0  ;;  %v357_v5 = vsel %vm306_vm0, %v344_v63, 0.0 }
 0x120   : > { %v359_v7 = vsel %vm306_vm0, %v345_v2, 0.0 }
 0x121   : > { %v350_v59 = vadd.f32 %v349_v58, %v348_v56 }
 0x123   : > { %v352_v62 = vadd.f32 %v351_v61, %v350_v59 }
 0x125   : > { %v354_v1 = vadd.f32 %v353_v0, %v352_v62 }
 0x127   : > { %v356_v4 = vadd.f32 %v355_v3, %v354_v1 }
 0x129   : > { %v358_v6 = vadd.f32 %v357_v5, %v356_v4 }
 0x12b   : > { %v360_v8 = vadd.f32 %v359_v7, %v358_v6 }
 0x12d   : > { %v361_v9 = vrot.slane %v360_v8, 4 }
 0x12f   : > { %v362_v10 = vadd.f32 %v361_v9, %v360_v8 }
 0x131   : > { %v363_v11 = vrot.slane %v362_v10, 2 }
 0x133   : > { %v364_v12 = vadd.f32 %v363_v11, %v362_v10 }
 0x135   : > { %v365_v13 = vrot.slane %v364_v12, 1 }
 0x137   : > { %v366_v14 = vadd.f32 %v365_v13, %v364_v12 }
 0x139   : > { %v367_v15 = vmul.f32 0.015625, %v366_v14 }
 0x13b   : > { %v368_v16 = vadd.f32 1e-05, %v367_v15 }
 0x13d   : > { %611 = vrsqrt.f32 %v368_v16 }
 0x147   : > { %v612_v17 = vpop.eup %611 }
 0x148   : > { %v370_v18 = vmul.f32 %v612_v17, %v330_v42  ;;  %v371_v19 = vmul.f32 %v612_v17, %v331_v43  ;;  %v372_v20 = vmul.f32 %v612_v17, %v332_v44  ;;  %v373_v21 = vmul.f32 %v612_v17, %v333_v45 }
 0x149   : > { %v374_v22 = vmul.f32 %v612_v17, %v334_v46  ;;  %v375_v23 = vmul.f32 %v612_v17, %v335_v47  ;;  %v376_v24 = vmul.f32 %v612_v17, %v336_v48  ;;  %v377_v25 = vmul.f32 %v612_v17, %v337_v49 }
 0x14a   : > { %vm378_vm2 = vcmp.ge.f32.partialorder %v370_v18, 0.0  ;;  %vm379_vm3 = vcmp.ge.f32.partialorder %v371_v19, 0.0  ;;  %vm380_vm4 = vcmp.ge.f32.partialorder %v372_v20, 0.0  ;;  %vm381_vm5 = vcmp.ge.f32.partialorder %v373_v21, 0.0 }
 0x14b   : > { %vm382_vm6 = vcmp.ge.f32.partialorder %v374_v22, 0.0  ;;  %vm383_vm7 = vcmp.ge.f32.partialorder %v375_v23, 0.0  ;;  %vm384_vm8 = vcmp.ge.f32.partialorder %v376_v24, 0.0  ;;  %vm385_vm9 = vcmp.ge.f32.partialorder %v377_v25, 0.0 }
 0x14c   : > { %v386_v26 = vmul.f32 0.2, %v370_v18  ;;  %v387_v27 = vmul.f32 0.2, %v371_v19  ;;  %v388_v28 = vmul.f32 0.2, %v372_v20 }
 0x14d   : > { %v389_v29 = vmul.f32 0.2, %v373_v21  ;;  %v390_v30 = vmul.f32 0.2, %v374_v22  ;;  %v391_v31 = vmul.f32 0.2, %v375_v23 }
 0x14e   : > { %v392_v32 = vmul.f32 0.2, %v376_v24  ;;  %v393_v33 = vmul.f32 0.2, %v377_v25  ;;  %v394_v34 = vsel %vm378_vm2, %v370_v18, %v386_v26  ;;  %v395_v35 = vsel %vm379_vm3, %v371_v19, %v387_v27 }
 0x14f   : > { %v396_v36 = vsel %vm380_vm4, %v372_v20, %v388_v28  ;;  %v397_v37 = vsel %vm381_vm5, %v373_v21, %v389_v29  ;;  %v398_v38 = vsel %vm382_vm6, %v374_v22, %v390_v30  ;;  %v399_v39 = vsel %vm383_vm7, %v375_v23, %v391_v31 }
 0x150   : > { %v400_v40 = vsel %vm384_vm8, %v376_v24, %v392_v32  ;;  %v401_v41 = vsel %vm385_vm9, %v377_v25, %v393_v33  ;;  %v531_v42 = vpack.c.bf16 %v394_v34, %v394_v34  ;;  %v532_v43 = vpack.c.bf16 %v395_v35, %v395_v35 }
 0x151   : > { %v533_v44 = vpack.c.bf16 %v396_v36, %v396_v36  ;;  %v534_v45 = vpack.c.bf16 %v397_v37, %v397_v37  ;;  %v535_v46 = vpack.c.bf16 %v398_v38, %v398_v38  ;;  %v536_v47 = vpack.c.bf16 %v399_v39, %v399_v39 }
 0x152   : > { %v537_v48 = vpack.c.bf16 %v400_v40, %v400_v40  ;;  %v538_v49 = vpack.c.bf16 %v401_v41, %v401_v41  ;;  %435 = vst.msk [vmem:[%s143_s5] sm:$0xf] %vm434_vm1, %v531_v42  ;;  %436 = vst.msk [vmem:[%s143_s5 + $0x4] sm:$0xf] %vm434_vm1, %v532_v43 }
 0x153   : > { %437 = vst.msk [vmem:[%s143_s5 + $0x8] sm:$0xf] %vm434_vm1, %v533_v44  ;;  %438 = vst.msk [vmem:[%s143_s5 + $0xc] sm:$0xf] %vm434_vm1, %v534_v45 }
 0x154   : > { %439 = vst.msk [vmem:[%s143_s5 + $0x10] sm:$0xf] %vm434_vm1, %v535_v46  ;;  %440 = vst.msk [vmem:[%s143_s5 + $0x14] sm:$0xf] %vm434_vm1, %v536_v47 }
 0x155   : > { %441 = vst.msk [vmem:[%s143_s5 + $0x18] sm:$0xf] %vm434_vm1, %v537_v48  ;;  %442 = vst.msk [vmem:[%s143_s5 + $0x1c] sm:$0xf] %vm434_vm1, %v538_v49 }
 0x156 PF: > { %s12_s9 = sadd.s32 1, %s619_s9  }
 0x157   : > { %p9_p4 = scmp.ge.s32.totalorder %s12_s9, 4  }
 0x159   :  { %11 = sbr.rel (!%p9_p4) target bundleno = 1 (0x1), region = 58 }

// kernel: discriminator_forward.7
= control target key start
LH: loop header
LB: loop body
LE: loop exit
PB: predicated region body
PF: predicated region fallthrough
CT: control target
= control target key end

     0   :  { %s537_s9 = smov 0   ;;  %s610_s0 = inlined_call_operand.vmem [shape: bf16[2,16,256], index: 0, kind: input, shape index: {}]   ;;  %s611_s1 = inlined_call_operand.vmem [shape: bf16[256,32], index: 1, kind: input, shape index: {}]   ;;  %s612_s2 = inlined_call_operand.vmem [shape: bf16[2,16,32], index: 2, kind: output, shape index: {}]  }
   0x1 LB: > { %s428_s10 = sadd.s32 4294967295, %s520_s9   ;;  %p432_p0 = scmp.ge.s32.totalorder %s520_s9, 1  ;;  %s520_s9 = sphi %s537_s9, %s12_s9  }
   0x2   : > { %p112_p1 = scmp.lt.s32.totalorder %s520_s9, 3 }
   0x4   : > { %p113_p2 = pnand %p432_p0, %p112_p1 }
   0x5   : > { %v493_v0 = vld [vmem:[%s611_s1 + $0x40] sm:$0xff] (!%p113_p2)   ;;  %v495_v2 = vld [vmem:[%s611_s1 + $0x48] sm:$0xff] (!%p113_p2)   ;;  %p134_p3 = scmp.lt.s32.totalorder (!%p113_p2), %s428_s10, 1  ;;  %v497_v4 = vld [vmem:[%s611_s1 + $0x50] sm:$0xff] (!%p113_p2)   ;;  %vm326_vm0 = vcmask (!%p113_p2), 261120   ;;  %vm370_vm3 = vcmask (!%p113_p2), 257024  }
   0x6   : > { %116 = sbr.rel (%p113_p2) target bundleno = 314 (0x13a), region = 28  ;;  %v494_v1 = vld [vmem:[%s611_s1] sm:$0xff] (!%p113_p2)   ;;  %463 = vmatprep.subr.bf16.mxu0 (!%p113_p2), %v493_v0  ;;  %v496_v3 = vld [vmem:[%s611_s1 + $0x8] sm:$0xff] (!%p113_p2)   ;;  %v498_v5 = vld [vmem:[%s611_s1 + $0x10] sm:$0xff] (!%p113_p2)  }
   0x7   : > { %464 = vmatpush3.bf16.msra.mxu0 (!%p113_p2), %v494_v1  ;;  %v499_v6 = vld [vmem:[%s611_s1 + $0x58] sm:$0xff] (!%p113_p2)   ;;  %v501_v8 = vld [vmem:[%s611_s1 + $0x60] sm:$0xff] (!%p113_p2)   ;;  %v503_v10 = vld [vmem:[%s611_s1 + $0x68] sm:$0xff] (!%p113_p2)  }
   0x8   : > { %465 = vmatprep.subr.bf16.mxu0 (!%p113_p2), %v495_v2  ;;  %v500_v7 = vld [vmem:[%s611_s1 + $0x18] sm:$0xff] (!%p113_p2)   ;;  %v502_v9 = vld [vmem:[%s611_s1 + $0x20] sm:$0xff] (!%p113_p2)   ;;  %v504_v12 = vld [vmem:[%s611_s1 + $0x28] sm:$0xff] (!%p113_p2)  }
   0x9   : > { %v505_v13 = vld [vmem:[%s611_s1 + $0x70] sm:$0xff] (!%p113_p2)   ;;  %v507_v15 = vld [vmem:[%s611_s1 + $0x78] sm:$0xff] (!%p113_p2)  }
   0xa   : > { %v506_v14 = vld [vmem:[%s611_s1 + $0x30] sm:$0xff] (!%p113_p2)   ;;  %v508_v16 = vld [vmem:[%s611_s1 + $0x38] sm:$0xff] (!%p113_p2)  }
   0xb   : > { %466 = vmatpush3.bf16.msra.mxu0 (!%p113_p2), %v496_v3 }
   0xc   : > { %467 = vmatprep.subr.bf16.mxu0 (!%p113_p2), %v497_v4 }
   0xd   : > { %s614_s10 = smov (!%p134_p3, %s428_s10), 1 }
   0xe   : > { %s459_s27 = sshll.u32 %s614_s10, 4  ;;  %s460_s21 = sshll.u32 %s614_s10, 3 }
   0xf   : > { %468 = vmatpush3.bf16.msra.mxu0 %v498_v5  ;;  %s138_s4 = scalar_lea.vmem %s610_s0, %s459_s27  ;;  %s143_s24 = scalar_lea.vmem %s612_s2, %s460_s21 }
  0x10   : > { %469 = vmatprep.subr.bf16.mxu0 %v499_v6  ;;  %v511_v11 = vld [vmem:[%s138_s4 + $0x4] ss:$8 sps:$4 sm:$0xff]   ;;  %v509_v17 = vld [vmem:[%s138_s4] ss:$8 sps:$4 sm:$0xff]  }
  0x11   : > { %317 = vmatprep.mubr.bf16.mxu0 %v511_v11 }
  0x13   : > { %470 = vmatpush3.bf16.msra.mxu0 %v500_v7 }
  0x14   : > { %471 = vmatprep.subr.bf16.mxu0 %v501_v8 }
  0x17   : > { %472 = vmatpush3.bf16.msra.mxu0 %v502_v9 }
  0x18   : > { %473 = vmatprep.subr.bf16.mxu0 %v503_v10 }
  0x1b   : > { %474 = vmatpush3.bf16.msra.mxu0 %v504_v12 }
  0x1c   : > { %475 = vmatprep.subr.bf16.mxu0 %v505_v13 }
  0x1f   : > { %476 = vmatpush3.bf16.msra.mxu0 %v506_v14 }
  0x20   : > { %477 = vmatprep.subr.bf16.mxu0 %v507_v15 }
  0x23   : > { %478 = vmatpush3.bf16.msra.mxu0 %v508_v16 }
  0x26   : > { %318 = vmatmul.mubr.bf16.vlgmr.msra.gmra.mrb[0].mxu0 %v509_v17 }
  0xf9   : > { %v479_v18 = vpop.f32.mrb[0].mxu0 }
  0xfa   : > { %v480_v19 = vpop.f32.mrb[1].mxu0 }
  0xfb   : > { %v481_v20 = vadd.f32 %v480_v19, %v479_v18  ;;  %v482_v21 = vpop.f32.mrb[2].mxu0 }
  0xfc   : > { %v483_v22 = vpop.f32.mrb[3].mxu0 }
  0xfd   : > { %v484_v23 = vadd.f32 %v483_v22, %v482_v21  ;;  %v327_v24 = vsel %vm326_vm0, %v481_v20, 0.0 }
  0xff   : > { %v328_v25 = vsel %vm326_vm0, %v484_v23, 0.0 }
 0x100   : > { %v329_v26 = vadd.f32 %v328_v25, %v327_v24 }
 0x102   : > { %v330_v27 = vrot.slane %v329_v26, 4 }
 0x104   : > { %v331_v28 = vadd.f32 %v330_v27, %v329_v26 }
 0x106   : > { %v332_v29 = vrot.slane %v331_v28, 2 }
 0x108   : > { %v333_v30 = vadd.f32 %v332_v29, %v331_v28 }
 0x10a   : > { %v334_v31 = vrot.slane %v333_v30, 1 }
 0x10c   : > { %v335_v32 = vadd.f32 %v334_v31, %v333_v30 }
 0x10e   : > { %v337_v33 = vmul.f32 0.0625, %v335_v32 }
 0x110   : > { %v338_v34 = vsub.f32 %v481_v20, %v337_v33  ;;  %v339_v35 = vsub.f32 %v484_v23, %v337_v33 }
 0x112   : > { %v340_v36 = vmul.f32 %v338_v34, %v338_v34  ;;  %v341_v37 = vmul.f32 %v339_v35, %v339_v35 }
 0x114   : > { %v342_v38 = vsel %vm326_vm0, %v340_v36, 0.0  ;;  %v343_v39 = vsel %vm326_vm0, %v341_v37, 0.0 }
 0x115   : > { %v344_v40 = vadd.f32 %v343_v39, %v342_v38 }
 0x117   : > { %v345_v41 = vrot.slane %v344_v40, 4 }
 0x119   : > { %v346_v42 = vadd.f32 %v345_v41, %v344_v40 }
 0x11b   : > { %v347_v43 = vrot.slane %v346_v42, 2 }
 0x11d   : > { %v348_v44 = vadd.f32 %v347_v43, %v346_v42 }
 0x11f   : > { %v349_v45 = vrot.slane %v348_v44, 1 }
 0x121   : > { %v350_v46 = vadd.f32 %v349_v45, %v348_v44 }
 0x123   : > { %v351_v47 = vmul.f32 0.0625, %v350_v46 }
 0x125   : > { %v352_v48 = vadd.f32 1e-05, %v351_v47 }
 0x127   : > { %512 = vrsqrt.f32 %v352_v48 }
 0x131   : > { %v513_v49 = vpop.eup %512 }
 0x132   : > { %v354_v50 = vmul.f32 %v513_v49, %v338_v34  ;;  %v355_v51 = vmul.f32 %v513_v49, %v339_v35 }
 0x134   : > { %vm356_vm1 = vcmp.ge.f32.partialorder %v354_v50, 0.0  ;;  %vm357_vm2 = vcmp.ge.f32.partialorder %v355_v51, 0.0  ;;  %v358_v52 = vmul.f32 0.2, %v354_v50  ;;  %v359_v53 = vmul.f32 0.2, %v355_v51 }
 0x136   : > { %v360_v54 = vsel %vm356_vm1, %v354_v50, %v358_v52  ;;  %v361_v55 = vsel %vm357_vm2, %v355_v51, %v359_v53 }
 0x137   : > { %v461_v56 = vpack.c.bf16 %v360_v54, %v360_v54  ;;  %v462_v57 = vpack.c.bf16 %v361_v55, %v361_v55 }
 0x139   : > { %371 = vst.msk [vmem:[%s143_s24] sm:$0xf] %vm370_vm3, %v461_v56  ;;  %372 = vst.msk [vmem:[%s143_s24 + $0x4] sm:$0xf] %vm370_vm3, %v462_v57 }
 0x13a PF: > { %s12_s9 = sadd.s32 1, %s520_s9  }
 0x13b   : > { %p9_p4 = scmp.ge.s32.totalorder %s12_s9, 4  }
 0x13d   :  { %11 = sbr.rel (!%p9_p4) target bundleno = 1 (0x1), region = 58 }

// kernel: discriminator_forward.8
= control target key start
LH: loop header
LB: loop body
LE: loop exit
PB: predicated region body
PF: predicated region fallthrough
CT: control target
= control target key end

     0   :  { %s739_s9 = smov 0   ;;  %s860_s0 = inlined_call_operand.vmem [shape: bf16[2,4,512], index: 0, kind: input, shape index: {}]   ;;  %s861_s1 = inlined_call_operand.vmem [shape: bf16[512,64], index: 1, kind: input, shape index: {}]   ;;  %s862_s2 = inlined_call_operand.vmem [shape: bf16[2,4,64], index: 2, kind: output, shape index: {}]  }
   0x1 LB: > { %s584_s10 = sadd.s32 4294967295, %s721_s9   ;;  %p588_p0 = scmp.ge.s32.totalorder %s721_s9, 1  ;;  %s721_s9 = sphi %s739_s9, %s12_s9  }
   0x2   : > { %p112_p1 = scmp.lt.s32.totalorder %s721_s9, 3 }
   0x4   : > { %p113_p2 = pnand %p588_p0, %p112_p1 }
   0x5   : > { %v680_v0 = vld [vmem:[%s861_s1 + $0x40] sm:$0xff] (!%p113_p2)   ;;  %v684_v4 = vld [vmem:[%s861_s1 + $0x48] sm:$0xff] (!%p113_p2)   ;;  %v688_v8 = vld [vmem:[%s861_s1 + $0x50] sm:$0xff] (!%p113_p2)   ;;  %p133_p3 = scmp.lt.s32.totalorder (!%p113_p2), %s584_s10, 1  ;;  %v213_v30 = vlaneseq (!%p113_p2)  ;;  %v723_v34 = vmov (!%p113_p2), 1983009808  }
   0x6   : > { %116 = sbr.rel (%p113_p2) target bundleno = 312 (0x138), region = 28  ;;  %v681_v1 = vld [vmem:[%s861_s1 + $0xc0] sm:$0xff] (!%p113_p2)   ;;  %627 = vmatprep.subr.bf16.mxu0 (!%p113_p2), %v680_v0  ;;  %v685_v5 = vld [vmem:[%s861_s1 + $0xc8] sm:$0xff] (!%p113_p2)   ;;  %v689_v9 = vld [vmem:[%s861_s1 + $0xd0] sm:$0xff] (!%p113_p2)   ;;  %v211_v35 = vunpack.c.l.s4 (!%p113_p2), %v723_v34  ;;  %vm502_vm0 = vcmask (!%p113_p2), 519168   ;;  %vm529_vm2 = vcmask (!%p113_p2), 517120  }
   0x7   : > { %v682_v2 = vld [vmem:[%s861_s1] sm:$0xff] (!%p113_p2)   ;;  %649 = vmatprep.subr.bf16.mxu1 (!%p113_p2), %v681_v1  ;;  %v686_v6 = vld [vmem:[%s861_s1 + $0x8] sm:$0xff] (!%p113_p2)   ;;  %v690_v10 = vld [vmem:[%s861_s1 + $0x10] sm:$0xff] (!%p113_p2)   ;;  %v214_v36 = vshrl.u32 (!%p113_p2), %v213_v30, 7 }
   0x8   : > { %v683_v3 = vld [vmem:[%s861_s1 + $0x80] sm:$0xff] (!%p113_p2)   ;;  %628 = vmatpush3.bf16.msra.mxu0 (!%p113_p2), %v682_v2  ;;  %v687_v7 = vld [vmem:[%s861_s1 + $0x88] sm:$0xff] (!%p113_p2)   ;;  %v691_v11 = vld [vmem:[%s861_s1 + $0x90] sm:$0xff] (!%p113_p2)   ;;  %v212_v37 = vunpack.c.0.s8 (!%p113_p2), %v211_v35 }
   0x9   : > { %650 = vmatpush3.bf16.msra.mxu1 (!%p113_p2), %v683_v3  ;;  %629 = vmatprep.subr.bf16.mxu0 (!%p113_p2), %v684_v4  ;;  %v692_v12 = vld [vmem:[%s861_s1 + $0x58] sm:$0xff] (!%p113_p2)   ;;  %v696_v16 = vld [vmem:[%s861_s1 + $0x60] sm:$0xff] (!%p113_p2)   ;;  %v700_v20 = vld [vmem:[%s861_s1 + $0x68] sm:$0xff] (!%p113_p2)  }
   0xa   : > { %651 = vmatprep.subr.bf16.mxu1 (!%p113_p2), %v685_v5  ;;  %v693_v13 = vld [vmem:[%s861_s1 + $0xd8] sm:$0xff] (!%p113_p2)   ;;  %v697_v17 = vld [vmem:[%s861_s1 + $0xe0] sm:$0xff] (!%p113_p2)   ;;  %v701_v21 = vld [vmem:[%s861_s1 + $0xe8] sm:$0xff] (!%p113_p2)   ;;  %v215_v39 = vsub.s32 (!%p113_p2), %v212_v37, %v214_v36 }
   0xb   : > { %v694_v14 = vld [vmem:[%s861_s1 + $0x18] sm:$0xff] (!%p113_p2)   ;;  %v698_v18 = vld [vmem:[%s861_s1 + $0x20] sm:$0xff] (!%p113_p2)   ;;  %v702_v22 = vld [vmem:[%s861_s1 + $0x28] sm:$0xff] (!%p113_p2)  }
   0xc   : > { %630 = vmatpush3.bf16.msra.mxu0 (!%p113_p2), %v686_v6  ;;  %v695_v15 = vld [vmem:[%s861_s1 + $0x98] sm:$0xff] (!%p113_p2)   ;;  %v699_v19 = vld [vmem:[%s861_s1 + $0xa0] sm:$0xff] (!%p113_p2)   ;;  %v703_v23 = vld [vmem:[%s861_s1 + $0xa8] sm:$0xff] (!%p113_p2)  }
   0xd   : > { %652 = vmatpush3.bf16.msra.mxu1 %v687_v7  ;;  %631 = vmatprep.subr.bf16.mxu0 %v688_v8  ;;  %s864_s10 = smov (!%p133_p3, %s584_s10), 1  ;;  %v704_v24 = vld [vmem:[%s861_s1 + $0x70] sm:$0xff]   ;;  %v708_v28 = vld [vmem:[%s861_s1 + $0x78] sm:$0xff]  }
   0xe   : > { %653 = vmatprep.subr.bf16.mxu1 %v689_v9  ;;  %v705_v25 = vld [vmem:[%s861_s1 + $0xf0] sm:$0xff]   ;;  %s626_s13 = sshll.u32 %s864_s10, 3  ;;  %v709_v29 = vld [vmem:[%s861_s1 + $0xf8] sm:$0xff]   ;;  %s591_s27 = sshll.u32 %s864_s10, 1 }
   0xf   : > { %v706_v26 = vld [vmem:[%s861_s1 + $0x30] sm:$0xff]   ;;  %s137_s22 = scalar_lea.vmem %s860_s0, %s626_s13  ;;  %v710_v31 = vld [vmem:[%s861_s1 + $0x38] sm:$0xff]   ;;  %s141_s30 = scalar_lea.vmem %s862_s2, %s591_s27 }
  0x10   : > { %632 = vmatpush3.bf16.msra.mxu0 %v690_v10  ;;  %v707_v27 = vld [vmem:[%s861_s1 + $0xb0] sm:$0xff]   ;;  %v711_v32 = vld [vmem:[%s861_s1 + $0xb8] sm:$0xff]   ;;  %v143_v33 = vld [vmem:[%s137_s22] sm:$0xff] }
  0x11   : > { %654 = vmatpush3.bf16.msra.mxu1 %v691_v11  ;;  %633 = vmatprep.subr.bf16.mxu0 %v692_v12  ;;  %v209_v38 = vcombine.high %v143_v33, %v143_v33  ;;  %v216_v40 = vrot.slane %v143_v33, %v215_v39 }
  0x12   : > { %655 = vmatprep.subr.bf16.mxu1 %v693_v13 }
  0x13   : > { %v223_v41 = vrot.slane %v209_v38, %v215_v39  ;;  %v224_v42 = vcombine.high %v216_v40, %v216_v40 }
  0x14   : > { %634 = vmatpush3.bf16.msra.mxu0 %v694_v14 }
  0x15   : > { %656 = vmatpush3.bf16.msra.mxu1 %v695_v15  ;;  %635 = vmatprep.subr.bf16.mxu0 %v696_v16  ;;  %v225_v43 = vcombine.high %v223_v41, %v223_v41 }
  0x16   : > { %657 = vmatprep.subr.bf16.mxu1 %v697_v17  ;;  %454 = vmatprep.mubr.bf16.mxu0 %v224_v42 }
  0x17   : > { %494 = vmatprep.mubr.bf16.mxu1 %v225_v43 }
  0x18   : > { %636 = vmatpush3.bf16.msra.mxu0 %v698_v18 }
  0x19   : > { %658 = vmatpush3.bf16.msra.mxu1 %v699_v19  ;;  %637 = vmatprep.subr.bf16.mxu0 %v700_v20 }
  0x1a   : > { %659 = vmatprep.subr.bf16.mxu1 %v701_v21 }
  0x1c   : > { %638 = vmatpush3.bf16.msra.mxu0 %v702_v22 }
  0x1d   : > { %660 = vmatpush3.bf16.msra.mxu1 %v703_v23  ;;  %639 = vmatprep.subr.bf16.mxu0 %v704_v24 }
  0x1e   : > { %661 = vmatprep.subr.bf16.mxu1 %v705_v25 }
  0x20   : > { %640 = vmatpush3.bf16.msra.mxu0 %v706_v26 }
  0x21   : > { %662 = vmatpush3.bf16.msra.mxu1 %v707_v27  ;;  %641 = vmatprep.subr.bf16.mxu0 %v708_v28 }
  0x22   : > { %663 = vmatprep.subr.bf16.mxu1 %v709_v29 }
  0x24   : > { %642 = vmatpush3.bf16.msra.mxu0 %v710_v31 }
  0x25   : > { %664 = vmatpush3.bf16.msra.mxu1 %v711_v32 }
  0x27   : > { %455 = vmatmul.mubr.bf16.vlgmr.msra.gmra.mrb[0].mxu0 %v216_v40 }
  0x28   : > { %495 = vmatmul.mubr.bf16.vlgmr.msra.gmra.mrb[0].mxu1 %v223_v41 }
  0xfa   : > { %v643_v44 = vpop.f32.mrb[0].mxu0 }
  0xfb   : > { %v665_v45 = vpop.f32.mrb[0].mxu1  ;;  %v644_v46 = vpop.f32.mrb[1].mxu0 }
  0xfc   : > { %v666_v47 = vpop.f32.mrb[1].mxu1  ;;  %v645_v48 = vadd.f32 %v644_v46, %v643_v44  ;;  %v646_v50 = vpop.f32.mrb[2].mxu0 }
  0xfd   : > { %v667_v49 = vadd.f32 %v666_v47, %v665_v45  ;;  %v668_v51 = vpop.f32.mrb[2].mxu1  ;;  %v647_v52 = vpop.f32.mrb[3].mxu0 }
  0xfe   : > { %v669_v53 = vpop.f32.mrb[3].mxu1 }
  0xff   : > { %v497_v54 = vadd.f32 %v667_v49, %v645_v48 }
 0x101   : > { %v503_v55 = vsel %vm502_vm0, %v497_v54, 0.0 }
 0x102   : > { %v504_v56 = vrot.slane %v503_v55, 4 }
 0x104   : > { %v505_v57 = vadd.f32 %v504_v56, %v503_v55 }
 0x106   : > { %v506_v58 = vrot.slane %v505_v57, 2 }
 0x108   : > { %v507_v59 = vadd.f32 %v506_v58, %v505_v57 }
 0x10a   : > { %v508_v60 = vrot.slane %v507_v59, 1 }
 0x10c   : > { %v509_v61 = vadd.f32 %v508_v60, %v507_v59 }
 0x10e   : > { %v511_v62 = vmul.f32 0.25, %v509_v61 }
 0x110   : > { %v512_v63 = vsub.f32 %v497_v54, %v511_v62 }
 0x112   : > { %v513_v0 = vmul.f32 %v512_v63, %v512_v63 }
 0x114   : > { %v514_v1 = vsel %vm502_vm0, %v513_v0, 0.0 }
 0x115   : > { %v515_v2 = vrot.slane %v514_v1, 4 }
 0x117   : > { %v516_v3 = vadd.f32 %v515_v2, %v514_v1 }
 0x119   : > { %v517_v4 = vrot.slane %v516_v3, 2 }
 0x11b   : > { %v518_v5 = vadd.f32 %v517_v4, %v516_v3 }
 0x11d   : > { %v519_v6 = vrot.slane %v518_v5, 1 }
 0x11f   : > { %v520_v7 = vadd.f32 %v519_v6, %v518_v5 }
 0x121   : > { %v521_v8 = vmul.f32 0.25, %v520_v7 }
 0x123   : > { %v522_v9 = vadd.f32 1e-05, %v521_v8 }
 0x125   : > { %713 = vrsqrt.f32 %v522_v9 }
 0x12f   : > { %v714_v10 = vpop.eup %713 }
 0x130   : > { %v524_v11 = vmul.f32 %v714_v10, %v512_v63 }
 0x132   : > { %vm525_vm1 = vcmp.ge.f32.partialorder %v524_v11, 0.0  ;;  %v526_v12 = vmul.f32 0.2, %v524_v11 }
 0x134   : > { %v527_v13 = vsel %vm525_vm1, %v524_v11, %v526_v12 }
 0x135   : > { %v528_v14 = vpack.c.bf16 %v527_v13, %v527_v13 }
 0x137   : > { %530 = vst.msk [vmem:[%s141_s30] sm:$0x3] %vm529_vm2, %v528_v14 }
 0x138 PF: > { %s12_s9 = sadd.s32 1, %s721_s9  }
 0x139   : > { %p9_p4 = scmp.ge.s32.totalorder %s12_s9, 4  }
 0x13b   :  { %11 = sbr.rel (!%p9_p4) target bundleno = 1 (0x1), region = 58 }

// kernel: discriminator_forward.9
= control target key start
LH: loop header
LB: loop body
LE: loop exit
PB: predicated region body
PF: predicated region fallthrough
CT: control target
= control target key end

     0   :  { %s1214_s14 = smov 0   ;;  %s1444_s0 = inlined_call_operand.vmem [shape: bf16[2,1,1024], index: 0, kind: input, shape index: {}]   ;;  %s1445_s1 = inlined_call_operand.vmem [shape: bf16[1024,1], index: 1, kind: input, shape index: {}]   ;;  %s1446_s2 = inlined_call_operand.<no memory space> [shape: f32[1,1], index: 2, kind: input, shape index: {}]   ;;  %s1447_s3 = inlined_call_operand.vmem [shape: f32[2,1,1], index: 3, kind: output, shape index: {}]  }
   0x1   :  { %v8_v0 = vstv %s1446_s2 }
   0x2   :  { %9 = vst [vmem:[#allocation2] sm:$0x1] %v8_v0 }
   0x3 LB: > { %s948_s15 = sadd.s32 4294967295, %s1188_s14   ;;  %p952_p0 = scmp.ge.s32.totalorder %s1188_s14, 1  ;;  %s1188_s14 = sphi %s1214_s14, %s15_s14  }
   0x4   : > { %p138_p1 = scmp.lt.s32.totalorder %s1188_s14, 3 }
   0x6   : > { %p139_p2 = pnand %p952_p0, %p138_p1 }
   0x7   : > { %v1117_v1 = vld [vmem:[%s1445_s1 + $0x40] sm:$0xff] (!%p139_p2)   ;;  %v1121_v5 = vld [vmem:[%s1445_s1 + $0x48] sm:$0xff] (!%p139_p2)   ;;  %v1125_v9 = vld [vmem:[%s1445_s1 + $0x50] sm:$0xff] (!%p139_p2)   ;;  %p159_p3 = scmp.lt.s32.totalorder (!%p139_p2), %s948_s15, 1  ;;  %v302_v29 = vlaneseq (!%p139_p2)  ;;  %v1190_v37 = vmov (!%p139_p2), 1966171168  }
   0x8   : > { %142 = sbr.rel (%p139_p2) target bundleno = 293 (0x125), region = 32  ;;  %v1118_v2 = vld [vmem:[%s1445_s1 + $0xc0] sm:$0xff] (!%p139_p2)   ;;  %1020 = vmatprep.subr.bf16.mxu0 (!%p139_p2), %v1117_v1  ;;  %v1122_v6 = vld [vmem:[%s1445_s1 + $0xc8] sm:$0xff] (!%p139_p2)   ;;  %v1126_v10 = vld [vmem:[%s1445_s1 + $0xd0] sm:$0xff] (!%p139_p2)   ;;  %v300_v38 = vunpack.c.l.s4 (!%p139_p2), %v1190_v37  ;;  %vm899_vm0 = vcmask (!%p139_p2), 0  }
   0x9   : > { %v1119_v3 = vld [vmem:[%s1445_s1] sm:$0xff] (!%p139_p2)   ;;  %1042 = vmatprep.subr.bf16.mxu1 (!%p139_p2), %v1118_v2  ;;  %v1123_v7 = vld [vmem:[%s1445_s1 + $0x8] sm:$0xff] (!%p139_p2)   ;;  %v1127_v11 = vld [vmem:[%s1445_s1 + $0x10] sm:$0xff] (!%p139_p2)   ;;  %v303_v34 = vshrl.u32 (!%p139_p2), %v302_v29, 7 }
   0xa   : > { %v1120_v4 = vld [vmem:[%s1445_s1 + $0x80] sm:$0xff] (!%p139_p2)   ;;  %1021 = vmatpush3.bf16.msra.mxu0 (!%p139_p2), %v1119_v3  ;;  %v1124_v8 = vld [vmem:[%s1445_s1 + $0x88] sm:$0xff] (!%p139_p2)   ;;  %v1128_v12 = vld [vmem:[%s1445_s1 + $0x90] sm:$0xff] (!%p139_p2)   ;;  %v301_v41 = vunpack.c.0.s8 (!%p139_p2), %v300_v38 }
   0xb   : > { %1043 = vmatpush3.bf16.msra.mxu1 (!%p139_p2), %v1120_v4  ;;  %1022 = vmatprep.subr.bf16.mxu0 (!%p139_p2), %v1121_v5  ;;  %v1129_v13 = vld [vmem:[%s1445_s1 + $0x58] sm:$0xff] (!%p139_p2)   ;;  %v1133_v17 = vld [vmem:[%s1445_s1 + $0x60] sm:$0xff] (!%p139_p2)   ;;  %v1137_v21 = vld [vmem:[%s1445_s1 + $0x68] sm:$0xff] (!%p139_p2)  }
   0xc   : > { %1044 = vmatprep.subr.bf16.mxu1 (!%p139_p2), %v1122_v6  ;;  %v1130_v14 = vld [vmem:[%s1445_s1 + $0xd8] sm:$0xff] (!%p139_p2)   ;;  %v1134_v18 = vld [vmem:[%s1445_s1 + $0xe0] sm:$0xff] (!%p139_p2)   ;;  %v1138_v22 = vld [vmem:[%s1445_s1 + $0xe8] sm:$0xff] (!%p139_p2)   ;;  %v1334_v42 = vsub.s32 (!%p139_p2), %v301_v41, %v303_v34 }
   0xd   : > { %v1131_v15 = vld [vmem:[%s1445_s1 + $0x18] sm:$0xff] (!%p139_p2)   ;;  %v1135_v19 = vld [vmem:[%s1445_s1 + $0x20] sm:$0xff] (!%p139_p2)   ;;  %v1139_v23 = vld [vmem:[%s1445_s1 + $0x28] sm:$0xff] (!%p139_p2)  }
   0xe   : > { %1023 = vmatpush3.bf16.msra.mxu0 (!%p139_p2), %v1123_v7  ;;  %v1132_v16 = vld [vmem:[%s1445_s1 + $0x98] sm:$0xff] (!%p139_p2)   ;;  %v1136_v20 = vld [vmem:[%s1445_s1 + $0xa0] sm:$0xff] (!%p139_p2)   ;;  %v1140_v24 = vld [vmem:[%s1445_s1 + $0xa8] sm:$0xff] (!%p139_p2)  }
   0xf   : > { %1045 = vmatpush3.bf16.msra.mxu1 %v1124_v8  ;;  %1024 = vmatprep.subr.bf16.mxu0 %v1125_v9  ;;  %s1449_s15 = smov (!%p159_p3, %s948_s15), 1  ;;  %v1141_v25 = vld [vmem:[%s1445_s1 + $0x70] sm:$0xff]   ;;  %v1145_v30 = vld [vmem:[%s1445_s1 + $0x78] sm:$0xff]   ;;  %v1150_v36 = vld [vmem:[%s1445_s1 + $0x140] sm:$0xff]  }
  0x10   : > { %1046 = vmatprep.subr.bf16.mxu1 %v1126_v10  ;;  %v1142_v26 = vld [vmem:[%s1445_s1 + $0xf0] sm:$0xff]   ;;  %s953_s2 = sshll.u32 %s1449_s15, 3  ;;  %v1146_v31 = vld [vmem:[%s1445_s1 + $0xf8] sm:$0xff]   ;;  %v1151_v39 = vld [vmem:[%s1445_s1 + $0x1c0] sm:$0xff]   ;;  %s165_s19 = scalar_lea.vmem %s1447_s3, %s1449_s15 }
  0x11   : > { %v1143_v27 = vld [vmem:[%s1445_s1 + $0x30] sm:$0xff]   ;;  %s162_s26 = scalar_lea.vmem %s1444_s0, %s953_s2  ;;  %v1147_v32 = vld [vmem:[%s1445_s1 + $0x38] sm:$0xff]   ;;  %v1152_v49 = vld [vmem:[%s1445_s1 + $0x100] sm:$0xff]  }
  0x12   : > { %1025 = vmatpush3.bf16.msra.mxu0 %v1127_v11  ;;  %v1144_v28 = vld [vmem:[%s1445_s1 + $0xb0] sm:$0xff]   ;;  %v1148_v33 = vld [vmem:[%s1445_s1 + $0xb8] sm:$0xff]   ;;  %v167_v35 = vld [vmem:[%s162_s26] sm:$0xff] }
  0x13   : > { %1047 = vmatpush3.bf16.msra.mxu1 %v1128_v12  ;;  %1026 = vmatprep.subr.bf16.mxu0 %v1129_v13  ;;  %v298_v40 = vcombine.high %v167_v35, %v167_v35  ;;  %v305_v43 = vrot.slane %v167_v35, %v1334_v42  ;;  %v1154_v52 = vld [vmem:[%s1445_s1 + $0x148] sm:$0xff]   ;;  %v1153_v54 = vld [vmem:[%s1445_s1 + $0x180] sm:$0xff]   ;;  %v1158_v58 = vld [vmem:[%s1445_s1 + $0x150] sm:$0xff]  }
  0x14   : > { %1048 = vmatprep.subr.bf16.mxu1 %v1130_v14  ;;  %v1155_v55 = vld [vmem:[%s1445_s1 + $0x1c8] sm:$0xff]   ;;  %v1159_v60 = vld [vmem:[%s1445_s1 + $0x1d0] sm:$0xff]   ;;  %v1162_v62 = vld [vmem:[%s1445_s1 + $0x158] sm:$0xff]  }
  0x15   : > { %v1338_v44 = vrot.slane %v298_v40, %v1334_v42  ;;  %v313_v45 = vcombine.high %v305_v43, %v305_v43  ;;  %v321_v46 = vrot.slane %v305_v43, %v1334_v42  ;;  %v1156_v57 = vld [vmem:[%s1445_s1 + $0x108] sm:$0xff]   ;;  %v1160_v61 = vld [vmem:[%s1445_s1 + $0x110] sm:$0xff]   ;;  %v1163_v0 = vld [vmem:[%s1445_s1 + $0x1d8] sm:$0xff]  }
  0x16   : > { %1027 = vmatpush3.bf16.msra.mxu0 %v1131_v15  ;;  %v1157_v59 = vld [vmem:[%s1445_s1 + $0x188] sm:$0xff]   ;;  %v1161_v63 = vld [vmem:[%s1445_s1 + $0x190] sm:$0xff]   ;;  %v1164_v1 = vld [vmem:[%s1445_s1 + $0x118] sm:$0xff]  }
  0x17   : > { %1049 = vmatpush3.bf16.msra.mxu1 %v1132_v16  ;;  %1028 = vmatprep.subr.bf16.mxu0 %v1133_v17  ;;  %v314_v47 = vcombine.high %v1338_v44, %v1338_v44  ;;  %v335_v48 = vrot.slane %v313_v45, %v1334_v42  ;;  %v343_v51 = vcombine.high %v321_v46, %v321_v46  ;;  %v1166_v2 = vld [vmem:[%s1445_s1 + $0x160] sm:$0xff]   ;;  %v1165_v3 = vld [vmem:[%s1445_s1 + $0x198] sm:$0xff]   ;;  %v1170_v6 = vld [vmem:[%s1445_s1 + $0x168] sm:$0xff]  }
  0x18   : > { %1050 = vmatprep.subr.bf16.mxu1 %v1134_v18  ;;  %v1167_v4 = vld [vmem:[%s1445_s1 + $0x1e0] sm:$0xff]   ;;  %v1171_v8 = vld [vmem:[%s1445_s1 + $0x1e8] sm:$0xff]   ;;  %v1174_v10 = vld [vmem:[%s1445_s1 + $0x170] sm:$0xff]   ;;  %v328_v18 = vrot.slane %v1338_v44, %v1334_v42 }
  0x19   : > { %v342_v50 = vrot.slane %v314_v47, %v1334_v42  ;;  %771 = vmatprep.mubr.bf16.mxu0 %v335_v48  ;;  %v345_v53 = vcombine.high %v335_v48, %v335_v48  ;;  %v1168_v5 = vld [vmem:[%s1445_s1 + $0x120] sm:$0xff]   ;;  %v1172_v9 = vld [vmem:[%s1445_s1 + $0x128] sm:$0xff]   ;;  %v1175_v12 = vld [vmem:[%s1445_s1 + $0x1f0] sm:$0xff]  }
  0x1a   : > { %1029 = vmatpush3.bf16.msra.mxu0 %v1135_v19  ;;  %v1169_v7 = vld [vmem:[%s1445_s1 + $0x1a0] sm:$0xff]   ;;  %v1173_v11 = vld [vmem:[%s1445_s1 + $0x1a8] sm:$0xff]   ;;  %v1176_v13 = vld [vmem:[%s1445_s1 + $0x130] sm:$0xff]  }
  0x1b   : > { %1051 = vmatpush3.bf16.msra.mxu1 %v1136_v20  ;;  %1030 = vmatprep.subr.bf16.mxu0 %v1137_v21  ;;  %v346_v56 = vcombine.high %v342_v50, %v342_v50  ;;  %v1178_v14 = vld [vmem:[%s1445_s1 + $0x178] sm:$0xff]   ;;  %v1177_v15 = vld [vmem:[%s1445_s1 + $0x1b0] sm:$0xff]   ;;  %v344_v20 = vcombine.high %v328_v18, %v328_v18 }
  0x1c   : > { %1052 = vmatprep.subr.bf16.mxu1 %v1138_v22  ;;  %811 = vmatprep.mubr.bf16.mxu1 %v345_v53  ;;  %v1179_v16 = vld [vmem:[%s1445_s1 + $0x1f8] sm:$0xff]   ;;  %v296_v22 = vld [vmem:[#allocation2] sm:$0x1] }
  0x1d   : > { %v1180_v17 = vld [vmem:[%s1445_s1 + $0x138] sm:$0xff]  }
  0x1e   : > { %1031 = vmatpush3.bf16.msra.mxu0 %v1139_v23  ;;  %v1181_v19 = vld [vmem:[%s1445_s1 + $0x1b8] sm:$0xff]  }
  0x1f   : > { %1053 = vmatpush3.bf16.msra.mxu1 %v1140_v24  ;;  %1032 = vmatprep.subr.bf16.mxu0 %v1141_v25 }
  0x20   : > { %1054 = vmatprep.subr.bf16.mxu1 %v1142_v26 }
  0x22   : > { %1033 = vmatpush3.bf16.msra.mxu0 %v1143_v27 }
  0x23   : > { %1055 = vmatpush3.bf16.msra.mxu1 %v1144_v28  ;;  %1034 = vmatprep.subr.bf16.mxu0 %v1145_v30 }
  0x24   : > { %1056 = vmatprep.subr.bf16.mxu1 %v1146_v31 }
  0x26   : > { %1035 = vmatpush3.bf16.msra.mxu0 %v1147_v32 }
  0x27   : > { %1057 = vmatpush3.bf16.msra.mxu1 %v1148_v33  ;;  %1064 = vmatprep.subr.bf16.mxu0 %v1150_v36 }
  0x28   : > { %1086 = vmatprep.subr.bf16.mxu1 %v1151_v39 }
  0x29   : > { %772 = vmatmul.mubr.bf16.vlgmr.msra.gmra.mrb[0].mxu0 %v321_v46 }
  0x2a   : > { %1065 = vmatpush3.bf16.msra.mxu0 %v1152_v49  ;;  %812 = vmatmul.mubr.bf16.vlgmr.msra.gmra.mrb[0].mxu1 %v343_v51 }
  0x2b   : > { %1066 = vmatprep.subr.bf16.mxu0 %v1154_v52  ;;  %1087 = vmatpush3.bf16.msra.mxu1 %v1153_v54 }
  0x2c   : > { %851 = vmatprep.mubr.bf16.mxu0 %v342_v50  ;;  %1088 = vmatprep.subr.bf16.mxu1 %v1155_v55 }
  0x2d   : > { %891 = vmatprep.mubr.bf16.mxu1 %v346_v56 }
  0x2e   : > { %1067 = vmatpush3.bf16.msra.mxu0 %v1156_v57 }
  0x2f   : > { %1068 = vmatprep.subr.bf16.mxu0 %v1158_v58  ;;  %1089 = vmatpush3.bf16.msra.mxu1 %v1157_v59 }
  0x30   : > { %1090 = vmatprep.subr.bf16.mxu1 %v1159_v60 }
  0x32   : > { %1069 = vmatpush3.bf16.msra.mxu0 %v1160_v61 }
  0x33   : > { %1070 = vmatprep.subr.bf16.mxu0 %v1162_v62  ;;  %1091 = vmatpush3.bf16.msra.mxu1 %v1161_v63 }
  0x34   : > { %1092 = vmatprep.subr.bf16.mxu1 %v1163_v0 }
  0x36   : > { %1071 = vmatpush3.bf16.msra.mxu0 %v1164_v1 }
  0x37   : > { %1072 = vmatprep.subr.bf16.mxu0 %v1166_v2  ;;  %1093 = vmatpush3.bf16.msra.mxu1 %v1165_v3 }
  0x38   : > { %1094 = vmatprep.subr.bf16.mxu1 %v1167_v4 }
  0x3a   : > { %1073 = vmatpush3.bf16.msra.mxu0 %v1168_v5 }
  0x3b   : > { %1074 = vmatprep.subr.bf16.mxu0 %v1170_v6  ;;  %1095 = vmatpush3.bf16.msra.mxu1 %v1169_v7 }
  0x3c   : > { %1096 = vmatprep.subr.bf16.mxu1 %v1171_v8 }
  0x3e   : > { %1075 = vmatpush3.bf16.msra.mxu0 %v1172_v9 }
  0x3f   : > { %1076 = vmatprep.subr.bf16.mxu0 %v1174_v10  ;;  %1097 = vmatpush3.bf16.msra.mxu1 %v1173_v11 }
  0x40   : > { %1098 = vmatprep.subr.bf16.mxu1 %v1175_v12 }
  0x42   : > { %1077 = vmatpush3.bf16.msra.mxu0 %v1176_v13 }
  0x43   : > { %1078 = vmatprep.subr.bf16.mxu0 %v1178_v14  ;;  %1099 = vmatpush3.bf16.msra.mxu1 %v1177_v15 }
  0x44   : > { %1100 = vmatprep.subr.bf16.mxu1 %v1179_v16 }
  0x46   : > { %1079 = vmatpush3.bf16.msra.mxu0 %v1180_v17 }
  0x47   : > { %1101 = vmatpush3.bf16.msra.mxu1 %v1181_v19 }
  0x49   : > { %852 = vmatmul.mubr.bf16.vlgmr.msra.gmra.mrb[4].mxu0 %v328_v18 }
  0x4a   : > { %892 = vmatmul.mubr.bf16.vlgmr.msra.gmra.mrb[4].mxu1 %v344_v20 }
  0xfc   : > { %v1036_v21 = vpop.f32.mrb[0].mxu0 }
  0xfd   : > { %v1037_v23 = vpop.f32.mrb[1].mxu0  ;;  %v1058_v24 = vpop.f32.mrb[0].mxu1 }
  0xfe   : > { %v1038_v25 = vadd.f32 %v1037_v23, %v1036_v21  ;;  %v1039_v26 = vpop.f32.mrb[2].mxu0  ;;  %v1059_v27 = vpop.f32.mrb[1].mxu1 }
  0xff   : > { %v1040_v28 = vpop.f32.mrb[3].mxu0  ;;  %v1060_v30 = vadd.f32 %v1059_v27, %v1058_v24  ;;  %v1061_v31 = vpop.f32.mrb[2].mxu1 }
 0x100   : > { %v774_v29 = vadd.f32 %v1038_v25, %v296_v22  ;;  %v1062_v32 = vpop.f32.mrb[3].mxu1 }
 0x102   : > { %v814_v33 = vadd.f32 %v1060_v30, %v774_v29 }
 0x11c   : > { %v1080_v34 = vpop.f32.mrb[4].mxu0 }
 0x11d   : > { %v1081_v35 = vpop.f32.mrb[5].mxu0  ;;  %v1102_v36 = vpop.f32.mrb[4].mxu1 }
 0x11e   : > { %v1082_v37 = vadd.f32 %v1081_v35, %v1080_v34  ;;  %v1083_v38 = vpop.f32.mrb[6].mxu0  ;;  %v1103_v39 = vpop.f32.mrb[5].mxu1 }
 0x11f   : > { %v1084_v40 = vpop.f32.mrb[7].mxu0  ;;  %v1104_v42 = vadd.f32 %v1103_v39, %v1102_v36  ;;  %v1105_v43 = vpop.f32.mrb[6].mxu1 }
 0x120   : > { %v854_v41 = vadd.f32 %v1082_v37, %v814_v33  ;;  %v1106_v44 = vpop.f32.mrb[7].mxu1 }
 0x122   : > { %v894_v45 = vadd.f32 %v1104_v42, %v854_v41 }
 0x124   : > { %900 = vst.msk [vmem:[%s165_s19] sm:$0x1] %vm899_vm0, %v894_v45 }
 0x125 PF: > { %s15_s14 = sadd.s32 1, %s1188_s14  }
 0x126   : > { %p12_p4 = scmp.ge.s32.totalorder %s15_s14, 4  }
 0x128   :  { %14 = sbr.rel (!%p12_p4) target bundleno = 3 (0x3), region = 62 }

</bundles_post_ra>
